<compile_context>
chip_gen: v7x
topology: tpu7x:2x2x1
jax: 0.10.0
libtpu: 0.0.40
codegen_flags: <defaults>
</compile_context>

<pallas_src>
import jax
import jax.numpy as jnp
from jax.experimental import pallas as pl
from jax.experimental.pallas import tpu as pltpu


def _pqbast_kernel(x_ref, wbase_ref, bias_ref, wfront_ref, wp_ref, o_ref,
                   mid_ref):
    f32 = jnp.float32
    bf16 = jnp.bfloat16

    # j-invariant adapter front:  mid = x @ (W_T @ W_S @ W_A @ W_B @ W_Q).
    # Computed once per row tile (j == 0) and reused for every output-N tile.
    @pl.when(pl.program_id(1) == 0)
    def _():
        mid_ref[...] = jnp.dot(x_ref[...], wfront_ref[...],
                               preferred_element_type=f32)          # (TM, tr)

    # Adapter tail first (tiny K=tr matmul), base matmul last and added
    # immediately: keeps the (TM, TN) f32 accumulator live range short.
    h = jnp.dot(mid_ref[...].astype(bf16), wp_ref[...],
                preferred_element_type=f32)                         # (TM, TN)
    acc = h + jnp.dot(x_ref[...], wbase_ref[...],
                      preferred_element_type=f32)                   # (TM, TN)
    o_ref[...] = (acc + bias_ref[...]).astype(o_ref.dtype)


def prepare_kernel_weights(params, *, scaling, compute_dtype=jnp.bfloat16):
    """One-time wrapper-side prep: full adapter-front composition + casts.

    W_front = W_T^T @ W_S^T @ W_A^T @ W_B^T @ W_Q^T   (shape (d_in, tr)),
    composed in f32 via the cheap small inner products first; `scaling` is
    folded into W_P^T.  Valid because the chain has no nonlinearity.
    """
    f32 = jnp.float32
    w_bq    = params["w_b_t"].astype(f32) @ params["w_q_t"].astype(f32)   # (r, tr)
    w_abq   = params["w_a_t"].astype(f32) @ w_bq                          # (d_in, tr)
    w_sabq  = params["w_s_t"].astype(f32) @ w_abq                         # (tr, tr)
    w_front = params["w_t_t"].astype(f32) @ w_sabq                        # (d_in, tr)
    w_p_scaled = f32(scaling) * params["w_p_t"].astype(f32)               # (tr, d_out)
    return {
        "w_base":  params["w_base_t"].astype(compute_dtype),   # (d_in, d_out)
        "bias":    params["bias"].astype(f32),                 # (1, d_out), stays f32
        "w_front": w_front.astype(compute_dtype),              # (d_in, tr)
        "w_p":     w_p_scaled.astype(compute_dtype),           # (tr, d_out)
    }


def _vmem_need_bytes(tile_m, tile_n, d_in, tr):
    """Rough VMEM footprint (lane/sublane padding included) for the limit."""
    bf, f4 = 2, 4
    tr_lane = max(tr, 128)                       # lane padding of the thin dim
    need = 0
    need += 2 * tile_m * d_in * bf               # x tile (double buffered)
    need += 2 * d_in * tile_n * bf               # W_base tile (double buffered)
    need += 2 * 8 * tile_n * f4                  # bias tile (sublane padded)
    need += 1 * d_in * tr_lane * bf              # W_front (single buffer)
    need += 2 * max(tr, 16) * tile_n * bf        # W_P tile
    need += 2 * tile_m * tile_n * bf             # output tile
    need += tile_m * tr_lane * f4                # mid scratch
    return need


def pqbast_forward(x, kw, *, tile_m=256, tile_n=256, out_dtype=jnp.bfloat16):
    """x: (N, in_features) float32.  Returns (N, out_features) out_dtype.

    tile_m/tile_n = 256 match the 256x256 MXU on v6e/v7x and double weight
    reuse for the HBM-bound base matmul; tile_n must divide d_out and be a
    multiple of 128 (lane-dense output stores).
    """
    N, d_in = x.shape
    d_out = kw["w_base"].shape[1]
    tr = kw["w_front"].shape[1]

    tile_n = min(tile_n, d_out)
    assert d_out % tile_n == 0, "d_out must be a multiple of tile_n"
    assert tile_n % 128 == 0, "tile_n must be a multiple of 128"

    # Pad the token axis up to a multiple of tile_m (zero rows sliced off after).
    n_pad = (-N) % tile_m
    xp = jnp.pad(x, ((0, n_pad), (0, 0))) if n_pad else x
    n_rows = N + n_pad

    grid = (n_rows // tile_m, d_out // tile_n)

    # Explicit VMEM budget: computed need + headroom, capped at 48 MiB so the
    # scoped limit never claims all of v7x's 64 MiB per-TC VMEM.
    vmem_limit = min(
        48 * 1024 * 1024,
        max(_vmem_need_bytes(tile_m, tile_n, d_in, tr) + 8 * 1024 * 1024,
            16 * 1024 * 1024))

    out_bytes = jnp.dtype(out_dtype).itemsize
    flops = (2 * n_rows * d_in * d_out        # base matmul
             + 2 * n_rows * d_in * tr         # x @ W_front
             + 2 * n_rows * tr * d_out)       # mid @ W_P
    bytes_accessed = (n_rows * d_in * 2       # x (bf16)
                      + d_in * d_out * 2      # W_base
                      + d_out * 4             # bias
                      + d_in * tr * 2         # W_front
                      + tr * d_out * 2        # W_P
                      + n_rows * d_out * out_bytes)

    out = pl.pallas_call(
        _pqbast_kernel,
        out_shape=jax.ShapeDtypeStruct((n_rows, d_out), out_dtype),
        grid_spec=pltpu.PrefetchScalarGridSpec(
            num_scalar_prefetch=0,
            grid=grid,
            in_specs=[
                pl.BlockSpec((tile_m, d_in), lambda i, j: (i, 0)),   # x (held across j)
                pl.BlockSpec((d_in, tile_n), lambda i, j: (0, j)),   # W_base^T tile
                pl.BlockSpec((1, tile_n),    lambda i, j: (0, j)),   # bias tile (f32)
                pl.BlockSpec((d_in, tr),     lambda i, j: (0, 0),    # composed adapter front
                             pipeline_mode=pl.Buffered(1)),          #   (resident, single buffer)
                pl.BlockSpec((tr, tile_n),   lambda i, j: (0, j)),   # scaling * W_P^T tile
            ],
            out_specs=pl.BlockSpec((tile_m, tile_n), lambda i, j: (i, j)),
            scratch_shapes=[pltpu.VMEM((tile_m, tr), jnp.float32)],  # hoisted mid = x @ W_front
        ),
        compiler_params=pltpu.CompilerParams(
            # i shards across cores (megacore); j is the sequential output-N
            # loop so the pl.when(j == 0) hoist is valid.
            dimension_semantics=("parallel", "arbitrary"),
            vmem_limit_bytes=vmem_limit,
        ),
        cost_estimate=pl.CostEstimate(flops=flops, transcendentals=0,
                                      bytes_accessed=bytes_accessed),
    )(xp.astype(jnp.bfloat16), kw["w_base"], kw["bias"],
      kw["w_front"], kw["w_p"])

    return out[:N] if n_pad else out


def _make_params(key, d_in, d_out, r, tr):
    """Deterministic synthetic weights; stored already transposed to (fan_in, fan_out)."""
    ks = jax.random.split(key, 8)
    std = 0.05
    return {
        "w_base_t": std * jax.random.normal(ks[0], (d_in, d_out), jnp.float32),
        "bias":     std * jax.random.normal(ks[1], (1, d_out), jnp.float32),
        "w_t_t":    std * jax.random.normal(ks[2], (d_in, tr), jnp.float32),
        "w_s_t":    std * jax.random.normal(ks[3], (tr, d_in), jnp.float32),
        "w_a_t":    std * jax.random.normal(ks[4], (d_in, r), jnp.float32),
        # lora_B is zero-init in standard LoRA; nonzero here so the adapter
        # path is actually exercised.
        "w_b_t":    std * jax.random.normal(ks[5], (r, d_out), jnp.float32),
        "w_q_t":    std * jax.random.normal(ks[6], (d_out, tr), jnp.float32),
        "w_p_t":    std * jax.random.normal(ks[7], (tr, d_out), jnp.float32),
    }


def _reference(x, p, scaling):
    """f32 reference following the module's un-composed forward chain."""
    base = x @ p["w_base_t"] + p["bias"]
    h = x @ p["w_t_t"]
    h = h @ p["w_s_t"]
    h = h @ p["w_a_t"]
    h = h @ p["w_b_t"]
    h = h @ p["w_q_t"]
    h = h @ p["w_p_t"]
    return base + scaling * h


if __name__ == "__main__":
    # Small but representative shapes: features are multiples of 128 (lane-dense,
    # unmasked stores); d_out spans two 256-wide output tiles so the pl.when
    # hoist path is exercised; the token count is NOT a multiple of tile_m so
    # the padding path is exercised.  Grid ends up (3, 2).
    batch, seq = 4, 160
    d_in, d_out = 512, 512
    r = 8
    transform_r_multiple = 2
    tr = transform_r_multiple * r
    lora_alpha = 16
    scaling = lora_alpha / r            # standard LoRA scaling (use_rslora=False)

    key = jax.random.PRNGKey(0)
    kx, kp = jax.random.split(key)
    x = jax.random.normal(kx, (batch, seq, d_in), jnp.float32)
    params = _make_params(kp, d_in, d_out, r, tr)

    kparams = prepare_kernel_weights(params, scaling=scaling)

    x2d = x.reshape(batch * seq, d_in)      # flatten tokens (glue)
    out = pqbast_forward(x2d, kparams, tile_m=256, tile_n=256)
    out = jax.block_until_ready(out)
    out3d = out.astype(jnp.float32).reshape(batch, seq, d_out)

    ref = _reference(x2d, params, scaling).reshape(batch, seq, d_out)
    # bf16 operands + bf16 output -> loosened tolerance vs the pure-f32 reference.
    assert jnp.allclose(out3d, ref, atol=7e-2, rtol=7e-2), "mismatch vs reference"

    # TODO(synk): per-row adapter routing (adapter_names sub-batches), dropout
    # RNG (p>0), and the merge/unmerge state machine are host-side bookkeeping;
    # this kernel implements the single-adapter, not-merged, p=0 forward path.
    print("KERNEL_OK")
</pallas_src>

<mosaic_0001>
module attributes {stable_mosaic.version = 11 : i64} {
  func.func @_pqbast_kernel(%arg0: i32, %arg1: i32, %arg2: memref<256x512xbf16, #tpu.memory_space<vmem>>, %arg3: memref<512x256xbf16, #tpu.memory_space<vmem>>, %arg4: memref<1x256xf32, #tpu.memory_space<vmem>>, %arg5: memref<512x16xbf16, #tpu.memory_space<vmem>>, %arg6: memref<16x256xbf16, #tpu.memory_space<vmem>>, %arg7: memref<256x256xbf16, #tpu.memory_space<vmem>>, %arg8: memref<256x16xf32, #tpu.memory_space<vmem>>) attributes {dimension_semantics = [#tpu.dimension_semantics<parallel>, #tpu.dimension_semantics<arbitrary>], iteration_bounds = array<i64: 3, 2>, scalar_prefetch = 0 : i64, scratch_operands = 1 : i64, tpu.core_type = #tpu.core_type<tc>, window_params = [{transform_indices = @transform_0, window_bounds = array<i64: 256, 512>}, {transform_indices = @transform_1, window_bounds = array<i64: 512, 256>}, {transform_indices = @transform_2, window_bounds = array<i64: 1, 256>}, {pipeline_mode = #tpu.pipeline_mode<synchronous>, transform_indices = @transform_3, window_bounds = array<i64: 512, 16>}, {transform_indices = @transform_4, window_bounds = array<i64: 16, 256>}, {transform_indices = @transform_5, window_bounds = array<i64: 256, 256>}]} {
    %c0_i32 = arith.constant 0 : i32
    %0 = arith.cmpi eq, %arg1, %c0_i32 : i32
    %1 = arith.extui %0 : i1 to i32
    %c0_i32_0 = arith.constant 0 : i32
    %2 = arith.cmpi ne, %1, %c0_i32_0 : i32
    scf.if %2 {
      %c0_13 = arith.constant 0 : index
      %c0_14 = arith.constant 0 : index
      %16 = vector.load %arg2[%c0_13, %c0_14] : memref<256x512xbf16, #tpu.memory_space<vmem>>, vector<256x512xbf16>
      %c0_15 = arith.constant 0 : index
      %c0_16 = arith.constant 0 : index
      %17 = vector.load %arg5[%c0_15, %c0_16] : memref<512x16xbf16, #tpu.memory_space<vmem>>, vector<512x16xbf16>
      %cst_17 = arith.constant dense<0.000000e+00> : vector<256x16xf32>
      %18 = tpu.matmul %16, %17, %cst_17 {dimension_numbers = #tpu.dot_dimension_numbers<[1], [0], [0], [1], [0, 0, 1, 1], [], []>} : vector<256x512xbf16>, vector<512x16xbf16>, vector<256x16xf32> -> vector<256x16xf32>
      %c0_18 = arith.constant 0 : index
      %c0_19 = arith.constant 0 : index
      %19 = vector.load %arg8[%c0_18, %c0_19] : memref<256x16xf32, #tpu.memory_space<vmem>>, vector<256x16xf32>
      tpu.vector_store %arg8[%c0_18, %c0_19], %18 {strides = array<i32>} : memref<256x16xf32, #tpu.memory_space<vmem>>, vector<256x16xf32>,
    } else {
    }
    %c0 = arith.constant 0 : index
    %c0_1 = arith.constant 0 : index
    %3 = vector.load %arg8[%c0, %c0_1] : memref<256x16xf32, #tpu.memory_space<vmem>>, vector<256x16xf32>
    %4 = arith.truncf %3 : vector<256x16xf32> to vector<256x16xbf16>
    %c0_2 = arith.constant 0 : index
    %c0_3 = arith.constant 0 : index
    %5 = vector.load %arg6[%c0_2, %c0_3] : memref<16x256xbf16, #tpu.memory_space<vmem>>, vector<16x256xbf16>
    %cst = arith.constant dense<0.000000e+00> : vector<256x256xf32>
    %6 = tpu.matmul %4, %5, %cst {dimension_numbers = #tpu.dot_dimension_numbers<[1], [0], [0], [1], [0, 0, 1, 1], [], []>} : vector<256x16xbf16>, vector<16x256xbf16>, vector<256x256xf32> -> vector<256x256xf32>
    %c0_4 = arith.constant 0 : index
    %c0_5 = arith.constant 0 : index
    %7 = vector.load %arg2[%c0_4, %c0_5] : memref<256x512xbf16, #tpu.memory_space<vmem>>, vector<256x512xbf16>
    %c0_6 = arith.constant 0 : index
    %c0_7 = arith.constant 0 : index
    %8 = vector.load %arg3[%c0_6, %c0_7] : memref<512x256xbf16, #tpu.memory_space<vmem>>, vector<512x256xbf16>
    %cst_8 = arith.constant dense<0.000000e+00> : vector<256x256xf32>
    %9 = tpu.matmul %7, %8, %cst_8 {dimension_numbers = #tpu.dot_dimension_numbers<[1], [0], [0], [1], [0, 0, 1, 1], [], []>} : vector<256x512xbf16>, vector<512x256xbf16>, vector<256x256xf32> -> vector<256x256xf32>
    %10 = arith.addf %6, %9 : vector<256x256xf32>
    %c0_9 = arith.constant 0 : index
    %c0_10 = arith.constant 0 : index
    %11 = vector.load %arg4[%c0_9, %c0_10] : memref<1x256xf32, #tpu.memory_space<vmem>>, vector<1x256xf32>
    %12 = vector.broadcast %11 : vector<1x256xf32> to vector<256x256xf32>
    %13 = arith.addf %10, %12 : vector<256x256xf32>
    %14 = arith.truncf %13 : vector<256x256xf32> to vector<256x256xbf16>
    %c0_11 = arith.constant 0 : index
    %c0_12 = arith.constant 0 : index
    %15 = vector.load %arg7[%c0_11, %c0_12] : memref<256x256xbf16, #tpu.memory_space<vmem>>, vector<256x256xbf16>
    tpu.vector_store %arg7[%c0_11, %c0_12], %14 {strides = array<i32>} : memref<256x256xbf16, #tpu.memory_space<vmem>>, vector<256x256xbf16>,
    return
  }
  func.func @transform_0(%arg0: i32, %arg1: i32) -> (i32, i32) {
    %c0_i32 = arith.constant 0 : i32
    %c0_i32_0 = arith.constant 0 : i32
    return %arg0, %c0_i32 : i32, i32
  }
  func.func @transform_1(%arg0: i32, %arg1: i32) -> (i32, i32) {
    %c0_i32 = arith.constant 0 : i32
    %c0_i32_0 = arith.constant 0 : i32
    return %c0_i32, %arg1 : i32, i32
  }
  func.func @transform_2(%arg0: i32, %arg1: i32) -> (i32, i32) {
    %c0_i32 = arith.constant 0 : i32
    %c0_i32_0 = arith.constant 0 : i32
    return %c0_i32, %arg1 : i32, i32
  }
  func.func @transform_3(%arg0: i32, %arg1: i32) -> (i32, i32) {
    %c0_i32 = arith.constant 0 : i32
    %c0_i32_0 = arith.constant 0 : i32
    %c0_i32_1 = arith.constant 0 : i32
    return %c0_i32, %c0_i32_0 : i32, i32
  }
  func.func @transform_4(%arg0: i32, %arg1: i32) -> (i32, i32) {
    %c0_i32 = arith.constant 0 : i32
    %c0_i32_0 = arith.constant 0 : i32
    return %c0_i32, %arg1 : i32, i32
  }
  func.func @transform_5(%arg0: i32, %arg1: i32) -> (i32, i32) {
    %c0_i32 = arith.constant 0 : i32
    return %arg0, %arg1 : i32, i32
  }
}

</mosaic_0001>

<bundles_post_ra>
// kernel: tpu_custom_call.1
= control target key start
LH: loop header
LB: loop body
LE: loop exit
PB: predicated region body
PF: predicated region fallthrough
CT: control target
= control target key end

     0   :  { %s5726_s0 = inlined_call_operand.hbm [shape: bf16[768,512], index: 0, kind: input, shape index: {}]   ;;  %s5727_s1 = inlined_call_operand.hbm [shape: bf16[512,512], index: 1, kind: input, shape index: {}]   ;;  %s5728_s2 = inlined_call_operand.vmem [shape: f32[1,512], index: 2, kind: input, shape index: {}]   ;;  %s5729_s3 = inlined_call_operand.vmem [shape: bf16[512,16], index: 3, kind: input, shape index: {}]   ;;  %s5730_s4 = inlined_call_operand.vmem [shape: bf16[16,512], index: 4, kind: input, shape index: {}]   ;;  %s5731_s5 = inlined_call_operand.hbm [shape: bf16[768,512], index: 5, kind: output, shape index: {}]  }
   0x1   :  { %5743 = sst [smem:[#allocation22_spill]] %s5726_s0 }
   0x2   :  { %5744 = sst [smem:[#allocation23_spill]] %s5731_s5 }
   0x3   :  { %10 = vsyncpa [#allocation4], 0 }
   0x4   :  { %12 = vsyncpa [#allocation4 + $0x1], 0 }
   0x5   :  { %13 = vsyncpa [#allocation7], 0 }
   0x6   :  { %15 = vsyncpa [#allocation7 + $0x1], 0 }
   0x7   :  { %16 = vsyncpa [#allocation5], 0 }
   0x8   :  { %18 = vsyncpa [#allocation5 + $0x1], 0  ;;  %s4717_s18 = smov 0   ;;  %s4719_s19 = smov 0  }
   0x9   :  { %s4721_s20 = smov 0   ;;  %s4723_s21 = smov 0  }
   0xa   :  { %s4725_s22 = smov 0   ;;  %s4727_s23 = smov 0  }
   0xb   :  { %s4729_s24 = smov 0   ;;  %s4731_s25 = smov 0  }
   0xc   :  { %s4733_s26 = smov 0   ;;  %s4735_s27 = smov 0  }
   0xd   :  { %s4737_s28 = smov 0   ;;  %s4739_s29 = smov 0  }
   0xe   :  { %s4741_s30 = smov 0   ;;  %s4743_s6 = smov 0  }
   0xf LB: > { %5745 = sst [smem:[#allocation13_spill]] %s4630_s20  ;;  %s5732_s7 = sadd.s32 4294967295, %s4674_s6   ;;  %s4674_s6 = sphi %s4743_s6, %s24_s6   ;;  %s4670_s30 = sphi %s4741_s30, %s5779_s30   ;;  %s4666_s29 = sphi %s4739_s29, %s5788_s29   ;;  %s4662_s28 = sphi %s4737_s28, %s5777_s28   ;;  %s4658_s27 = sphi %s4735_s27, %s5787_s27   ;;  %s4654_s26 = sphi %s4733_s26, %s5776_s26   ;;  %s4650_s25 = sphi %s4731_s25, %s5786_s25   ;;  %s4646_s24 = sphi %s4729_s24, %s5785_s24   ;;  %s4642_s23 = sphi %s4727_s23, %s5784_s23   ;;  %s4638_s22 = sphi %s4725_s22, %s5783_s22   ;;  %s4634_s21 = sphi %s4723_s21, %s5782_s21   ;;  %s4630_s20 = sphi %s4721_s20, %s5773_s20   ;;  %s4626_s19 = sphi %s4719_s19, %s5781_s19   ;;  %s4622_s18 = sphi %s4717_s18, %s5780_s18  }
  0x10   : > { %5746 = sst [smem:[#allocation14_spill]] %s4654_s26  ;;  %s33_s9 = sadd.s32 1, %s4666_s29 }
  0x11   : > { %5747 = sst [smem:[#allocation15_spill]] %s4662_s28  ;;  %s36_s10 = sadd.s32 1, %s4670_s30 }
  0x12   : > { %5748 = sst [smem:[#allocation16_spill]] %s4670_s30  ;;  %p34_p0 = scmp.ge.s32.totalorder %s33_s9, 2 }
  0x13   : > { %s43_s11 = sadd.s32 1, %s4654_s26  ;;  %p50_p1 = scmp.ne.s32.totalorder %s4654_s26, %s4650_s25 }
  0x14   : > { %p51_p2 = scmp.eq.s32.totalorder %s4674_s6, 0  ;;  %s5790_s9 = smov (%p34_p0, %s33_s9), 0 }
  0x15   : > { %5749 = sst [smem:[#allocation17_spill]] %s5790_s9  ;;  %s5792_s10 = smov (!%p34_p0, %s36_s10), %s4670_s30 }
  0x16   : > { %p4798_p3 = por %p51_p2, %p50_p1  ;;  %p56_p4 = scmp.ne.s32.totalorder %s4650_s25, %s4646_s24 }
  0x17   : > { %p38_p5 = scmp.ge.s32.totalorder %s5792_s10, 3  ;;  %p4805_p6 = scmp.eq.s32.totalorder %s5732_s7, 0 }
  0x18   : > { %s66_s14 = ssub.s32 %s4666_s29, %s5790_s9  ;;  %s69_s15 = sadd.s32 1, %s4642_s23 }
  0x19   : > { %s5794_s10 = smov (%p38_p5, %s5792_s10), 0  ;;  %p4816_p7 = por %p4805_p6, %p56_p4 }
  0x1a   : > { %5752 = sst [smem:[#allocation18_spill]] %s5794_s10  ;;  %p67_p8 = scmp.eq.s32.totalorder %s66_s14, 0 }
  0x1b   : > { %s5753_s16 = scalar_select %p4816_p7, 1, 0 }
  0x1c   : > { %s40_s17 = ssub.s32 %s4670_s30, %s5794_s10  ;;  %p76_p9 = scmp.ne.s32.totalorder %s4642_s23, %s4638_s22 }
  0x1d   : > { %p41_p10 = scmp.eq.s32.totalorder %s40_s17, 0  ;;  %p82_p11 = scmp.ne.s32.totalorder %s4638_s22, %s4634_s21 }
  0x1e   : > { %s4827_s24 = scalar_select %p67_p8, %s4642_s23, %s69_s15  }
  0x1f   : > { %s4830_s8 = scalar_select %p41_p10, %s4654_s26, %s43_s11  }
  0x20   : > { %5754 = sst [smem:[#allocation19_spill]] %s4827_s24  ;;  %p4834_p12 = por %p76_p9, %p51_p2 }
  0x21   : > { %5755 = sst [smem:[#allocation20_spill]] %s4830_s8  ;;  %p4840_p13 = por %p82_p11, %p4805_p6 }
  0x22   : > { %s167_s5 = sor.u32 %s66_s14, %s40_s17  ;;  %s170_s10 = sadd.s32 1, %s4630_s20 }
  0x23   : > { %s5757_s9 = scalar_select %p4840_p13, 1, 0 }
  0x24   : > { %p168_p0 = scmp.eq.s32.totalorder %s167_s5, 0  ;;  %p180_p1 = scmp.ne.s32.totalorder %s4630_s20, %s4626_s19 }
  0x25   : > { %s5758_s28 = sadd.s32 4294967295, %s4674_s6   ;;  %p186_p5 = scmp.ne.s32.totalorder %s4626_s19, %s4622_s18 }
  0x26   : > { %p181_p4 = scmp.eq.s32.totalorder %s5758_s28, 5  ;;  %s5761_s15 = sadd.s32 4294967294, %s4674_s6  }
  0x27   : > { %s4852_s21 = scalar_select %p168_p0, %s4630_s20, %s170_s10  }
  0x28   : > { %p4854_p8 = por %p181_p4, %p180_p1  ;;  %p187_p2 = scmp.eq.s32.totalorder %s5761_s15, 5 }
  0x29   : > { %5759 = sst [smem:[#allocation21_spill]] %s4852_s21  ;;  %p3294_p6 = scmp.ge.s32.totalorder %s4674_s6, 6 }
  0x2a   : > { %s5760_s11 = scalar_select %p4854_p8, 1, 0 }
  0x2b   : > { %p4860_p9 = por %p187_p2, %p186_p5  ;;  %206 = sbr.rel (%p3294_p6) target bundleno = 108 (0x6c), region = 20 }
  0x2c   : > { %s210_s5 = sand.u32 (!%p3294_p6), 1, %s4654_s26   ;;  %s3594_s28 = sshll.u32 (!%p3294_p6), %s4670_s30, 13 }
  0x2d   : > { %s5762_s13 = scalar_select %p4860_p9, 1, 0 }
  0x2e   : > { %s3295_s10 = sshll.u32 (!%p3294_p6), %s210_s5, 9  ;;  %s5763_s0 = sld [smem:[#allocation22_spill]] (!%p3294_p6) }
  0x2f   : > { %s214_s15 = scalar_lea.vmem (!%p3294_p6), [#allocation3], %s3295_s10  ;;  %s4874_s21 = scalar_lea.sflag (!%p3294_p6), [#allocation4], %s210_s5 }
  0x30   : > { %s222_s24 = sshll.u32 (!%p3294_p6), %s214_s15, 4  ;;  %s4872_s24 = int_to_ptr.vmem [resolvable:$true] %s222_s24 }
  0x34   : > { %s4870_s8 = scalar_lea.hbm %s5763_s0, %s3594_s28  ;;  %s4472_s28 = scalar_lea.hbm %s5763_s0, 24576 }
  0x35   : > { %s4468_s20 = scalar_lea.hbm %s4870_s8, 8192  ;;  %p4473_p1 = scmp.lt.u32.totalorder %s4870_s8, %s5763_s0 }
  0x36   : > { %p4469_p10 = scmp.ne.s32.totalorder %s4870_s8, %s4468_s20  ;;  %p4474_p4 = scmp.lt.u32.totalorder %s4472_s28, %s4468_s20 }
  0x37   : > { %p4476_p2 = scmp.lt.u32.totalorder %s4468_s20, %s4870_s8 }
  0x38   : > { %p4470_p11 = pnand %p4469_p10, %p4798_p3  ;;  %p4475_p5 = por %p4474_p4, %p4473_p1 }
  0x3a   : > { %p4471_p0 = pneg %p4470_p11  ;;  %p4477_p6 = por %p4476_p2, %p4475_p5 }
  0x3c   : > { %p4478_p9 = pnand %p4477_p6, %p4471_p0 }
  0x3e   : > { %4481 = shalt.err (!%p4478_p9)
}
  0x3f   : > { %s4482_s5 = scalar_lea.vmem %s4872_s24, 8192  ;;  %s4676_s26 = smov [#allocation3]  }
  0x40   : > { %p4483_p10 = scmp.ne.s32.totalorder %s4872_s24, %s4482_s5  ;;  %s4486_s30 = sshll.u32 %s4676_s26, 4  ;;  %s4487_s30 = int_to_ptr.vmem [resolvable:$false] %s4486_s30 }
  0x41   : > { %s4488_s10 = scalar_lea.vmem %s4487_s30, 16384  ;;  %p4489_p13 = scmp.lt.s32.totalorder %s4872_s24, %s4487_s30 }
  0x42   : > { %p4484_p11 = pnand %p4483_p10, %p4798_p3  ;;  %p4490_p7 = scmp.lt.s32.totalorder %s4488_s10, %s4482_s5 }
  0x44   : > { %p4485_p8 = pneg %p4484_p11  ;;  %p4491_p1 = por %p4490_p7, %p4489_p13 }
  0x46   : > { %p4492_p4 = pnand %p4491_p1, %p4485_p8 }
  0x48   : > { %4495 = shalt.err (!%p4492_p4)
}
  0x49   : > { %s4677_s20 = smov 256   ;;  %s4678_s15 = smov 16  }
  0x4a   : > { %4014 = dma.hbm_to_vmem [thread:$0]  (%p4798_p3), %s4870_s8, 8192, %s4872_s24, %s4874_s21, %s4677_s20, %s4677_s20, %s4678_s15  }
  0x4b   : > { %s4901_s28 = sand.u32 1, %s4642_s23   ;;  %s3595_s14 = sshll.u32 %s4666_s29, 7 }
  0x4c   : > { %s3299_s17 = sshll.u32 %s4901_s28, 9  ;;  %s4908_s30 = scalar_lea.hbm %s5727_s1, %s3595_s14 }
  0x4d   : > { %s236_s10 = scalar_lea.vmem [#allocation6], %s3299_s17  ;;  %s233_s8 = scalar_lea.sflag [#allocation7], %s4901_s28 }
  0x4e   : > { %s243_s12 = sshll.u32 %s236_s10, 4  ;;  %s4496_s24 = scalar_lea.hbm %s4908_s30, 8192  ;;  %s4910_s12 = int_to_ptr.vmem [resolvable:$true] %s243_s12 }
  0x4f   : > { %p4497_p3 = scmp.ne.s32.totalorder %s4908_s30, %s4496_s24  ;;  %s4500_s5 = scalar_lea.hbm %s5727_s1, 16384 }
  0x50   : > { %p4501_p8 = scmp.lt.u32.totalorder %s4908_s30, %s5727_s1  ;;  %p4502_p9 = scmp.lt.u32.totalorder %s4500_s5, %s4496_s24 }
  0x51   : > { %p4498_p7 = pnand %p4497_p3, %p4834_p12  ;;  %p4504_p5 = scmp.lt.u32.totalorder %s4496_s24, %s4908_s30 }
  0x52   : > { %p4503_p0 = por %p4502_p9, %p4501_p8 }
  0x53   : > { %p4499_p13 = pneg %p4498_p7 }
  0x54   : > { %p4505_p2 = por %p4504_p5, %p4503_p0 }
  0x56   : > { %p4506_p6 = pnand %p4505_p2, %p4499_p13 }
  0x58   : > { %4509 = shalt.err (!%p4506_p6)
}
  0x59   : > { %s4510_s17 = scalar_lea.vmem %s4910_s12, 8192  ;;  %s4679_s10 = smov [#allocation6]  }
  0x5a   : > { %p4511_p10 = scmp.ne.s32.totalorder %s4910_s12, %s4510_s17  ;;  %s4514_s21 = sshll.u32 %s4679_s10, 4  ;;  %s4515_s21 = int_to_ptr.vmem [resolvable:$false] %s4514_s21 }
  0x5b   : > { %s4516_s15 = scalar_lea.vmem %s4515_s21, 16384  ;;  %p4517_p4 = scmp.lt.s32.totalorder %s4910_s12, %s4515_s21 }
  0x5c   : > { %p4512_p11 = pnand %p4511_p10, %p4834_p12  ;;  %p4518_p3 = scmp.lt.s32.totalorder %s4516_s15, %s4510_s17 }
  0x5e   : > { %p4513_p1 = pneg %p4512_p11  ;;  %p4519_p7 = por %p4518_p3, %p4517_p4 }
  0x60   : > { %p4520_p8 = pnand %p4519_p7, %p4513_p1 }
  0x62   : > { %4523 = shalt.err (!%p4520_p8)
}
  0x63   : > { %s4680_s24 = smov 128   ;;  %s4681_s5 = smov 8  }
  0x64   : > { %4015 = dma.hbm_to_vmem [thread:$0]  (%p4834_p12), %s4908_s30, 8192, %s4910_s12, %s233_s8, %s4677_s20, %s4680_s24, %s4681_s5  }
  0x65   : > { %260 = sbr.rel (!%p4834_p12) target bundleno = 108 (0x6c), region = 36  ;;  %s3302_s14 = sshll.u32 (%p4834_p12), %s4901_s28, 4 }
  0x66   : > { %s3596_s26 = sshll.u32 (%p4834_p12), %s4666_s29, 3  ;;  %s264_s15 = scalar_lea.vmem (%p4834_p12), [#allocation8], %s3302_s14 }
  0x67   : > { %s267_s21 = scalar_lea.vmem (%p4834_p12), %s5730_s4, %s3596_s26 }
  0x68   : > { %v297_v0 = vld [vmem:[%s267_s21] sm:$0xff] (%p4834_p12)  ;;  %v299_v1 = vld [vmem:[%s267_s21 + $0x10] sm:$0xff] (%p4834_p12) }
  0x69   : > { %298 = vst [vmem:[%s264_s15] sm:$0xff] (%p4834_p12), %v297_v0  ;;  %300 = vst [vmem:[%s264_s15 + $0x8] sm:$0xff] (%p4834_p12), %v299_v1 }
  0x6c PF: > { %p3305_p13 = scmp.ge.s32.totalorder %s4674_s6, 1  ;;  %p305_p9 = scmp.lt.s32.totalorder %s4674_s6, 7 }
  0x6e   : > { %p306_p12 = pnand %p3305_p13, %p305_p9 }
  0x6f   : > { %s311_s7 = sand.u32 (!%p306_p12), 1, %s4650_s25   ;;  %p5764_p0 = scmp.ne.s32.totalorder (!%p306_p12), %s5753_s16, 0 }
  0x70   : > { %309 = sbr.rel (%p306_p12) target bundleno = 991 (0x3df), region = 74  ;;  %s3306_s20 = sshll.u32 (!%p306_p12), %s311_s7, 9 }
  0x71   : > { %s312_s28 = scalar_lea.sflag (!%p306_p12), [#allocation4], %s311_s7  ;;  %s4947_s30 = scalar_lea.vmem (!%p306_p12), [#allocation3], %s3306_s20 }
  0x77   : > { %4609 = dma.done.wait (%p5764_p0), %s312_s28, 8192  }
  0x78   : > { %4611 = vsyncadd (%p5764_p0), %s312_s28, 4294959104  ;;  %s320_s12 = sand.u32 1, %s4638_s22   ;;  %p5765_p5 = scmp.ne.s32.totalorder %s5757_s9, 0 }
  0x79   : > { %s3307_s8 = sshll.u32 %s320_s12, 9  ;;  %s321_s24 = scalar_lea.sflag [#allocation7], %s320_s12 }
  0x7a   : > { %s4954_s5 = scalar_lea.vmem [#allocation6], %s3307_s8 }
  0x7b   : > { %4613 = dma.done.wait (%p5765_p5), %s321_s24, 8192  }
  0x7c   : > { %4615 = vsyncadd (%p5765_p5), %s321_s24, 4294959104  ;;  %s3308_s14 = sshll.u32 %s320_s12, 4  ;;  %s5742_s26 = sand.u32 1, %s4626_s19  }
  0x7d   : > { %s3309_s16 = sshll.u32 %s5742_s26, 8  ;;  %s4964_s17 = sshll.u32 %s4658_s27, 1 }
  0x7e   : > { %p374_p2 = scmp.lt.s32.totalorder %s4964_s17, 3  ;;  %s4974_s7 = scalar_lea.vmem [#allocation8], %s3308_s14 }
  0x7f   : > { %s4976_s20 = scalar_lea.vmem [#allocation9], %s3309_s16  ;;  %p3311_p6 = scmp.ne.s32.totalorder %s4658_s27, 0 }
  0x80   : > { %s4968_s10 = scalar_select %p374_p2, %s4964_s17, 3 }
  0x81   : > { %385 = sbr.rel (%p3311_p6) target bundleno = 504 (0x1f8), region = 90  ;;  %v4145_v2 = vld [vmem:[%s5729_s3 + $0x40] sm:$0xff] (!%p3311_p6)   ;;  %v4149_v6 = vld [vmem:[%s5729_s3 + $0x48] sm:$0xff] (!%p3311_p6)   ;;  %v4153_v10 = vld [vmem:[%s5729_s3 + $0x50] sm:$0xff] (!%p3311_p6)   ;;  %vm1348_vm0 = vcmask (!%p3311_p6), 130048  }
  0x82   : > { %s376_s9 = scalar_lea.vmem %s5728_s2, %s4968_s10  ;;  %v4146_v3 = vld [vmem:[%s5729_s3 + $0xc0] sm:$0xff] (!%p3311_p6)   ;;  %3630 = vmatprep.subr.bf16.mxu0 (!%p3311_p6), %v4145_v2  ;;  %v4150_v7 = vld [vmem:[%s5729_s3 + $0xc8] sm:$0xff] (!%p3311_p6)   ;;  %v4154_v11 = vld [vmem:[%s5729_s3 + $0xd0] sm:$0xff] (!%p3311_p6)  }
  0x83   : > { %v4147_v4 = vld [vmem:[%s5729_s3] sm:$0xff] (!%p3311_p6)   ;;  %3742 = vmatprep.subr.bf16.mxu1 (!%p3311_p6), %v4146_v3  ;;  %v4151_v8 = vld [vmem:[%s5729_s3 + $0x8] sm:$0xff] (!%p3311_p6)   ;;  %v4155_v12 = vld [vmem:[%s5729_s3 + $0x10] sm:$0xff] (!%p3311_p6)  }
  0x84   : > { %v4148_v5 = vld [vmem:[%s5729_s3 + $0x80] sm:$0xff] (!%p3311_p6)   ;;  %3631 = vmatpush3.bf16.msra.mxu0 (!%p3311_p6), %v4147_v4  ;;  %v4152_v9 = vld [vmem:[%s5729_s3 + $0x88] sm:$0xff] (!%p3311_p6)   ;;  %v4156_v13 = vld [vmem:[%s5729_s3 + $0x90] sm:$0xff] (!%p3311_p6)  }
  0x85   : > { %3743 = vmatpush3.bf16.msra.mxu1 (!%p3311_p6), %v4148_v5  ;;  %3632 = vmatprep.subr.bf16.mxu0 (!%p3311_p6), %v4149_v6  ;;  %v4157_v14 = vld [vmem:[%s5729_s3 + $0x58] sm:$0xff] (!%p3311_p6)   ;;  %v4161_v18 = vld [vmem:[%s5729_s3 + $0x60] sm:$0xff] (!%p3311_p6)   ;;  %v4165_v22 = vld [vmem:[%s5729_s3 + $0x68] sm:$0xff] (!%p3311_p6)  }
  0x86   : > { %3744 = vmatprep.subr.bf16.mxu1 (!%p3311_p6), %v4150_v7  ;;  %v4158_v15 = vld [vmem:[%s5729_s3 + $0xd8] sm:$0xff] (!%p3311_p6)   ;;  %v4162_v19 = vld [vmem:[%s5729_s3 + $0xe0] sm:$0xff] (!%p3311_p6)   ;;  %v4166_v23 = vld [vmem:[%s5729_s3 + $0xe8] sm:$0xff] (!%p3311_p6)  }
  0x87   : > { %v4159_v16 = vld [vmem:[%s5729_s3 + $0x18] sm:$0xff] (!%p3311_p6)   ;;  %v4163_v20 = vld [vmem:[%s5729_s3 + $0x20] sm:$0xff] (!%p3311_p6)   ;;  %v4167_v24 = vld [vmem:[%s5729_s3 + $0x28] sm:$0xff] (!%p3311_p6)  }
  0x88   : > { %3633 = vmatpush3.bf16.msra.mxu0 %v4151_v8  ;;  %v4160_v17 = vld [vmem:[%s5729_s3 + $0x98] sm:$0xff]   ;;  %v4164_v21 = vld [vmem:[%s5729_s3 + $0xa0] sm:$0xff]   ;;  %v4168_v25 = vld [vmem:[%s5729_s3 + $0xa8] sm:$0xff]  }
  0x89   : > { %3745 = vmatpush3.bf16.msra.mxu1 %v4152_v9  ;;  %3634 = vmatprep.subr.bf16.mxu0 %v4153_v10  ;;  %v4169_v26 = vld [vmem:[%s5729_s3 + $0x70] sm:$0xff]   ;;  %v4173_v30 = vld [vmem:[%s5729_s3 + $0x78] sm:$0xff]  }
  0x8a   : > { %3746 = vmatprep.subr.bf16.mxu1 %v4154_v11  ;;  %v4170_v27 = vld [vmem:[%s5729_s3 + $0xf0] sm:$0xff]   ;;  %v4174_v31 = vld [vmem:[%s5729_s3 + $0xf8] sm:$0xff]  }
  0x8b   : > { %v4171_v28 = vld [vmem:[%s5729_s3 + $0x30] sm:$0xff]   ;;  %v4175_v32 = vld [vmem:[%s5729_s3 + $0x38] sm:$0xff]  }
  0x8c   : > { %3635 = vmatpush3.bf16.msra.mxu0 %v4155_v12  ;;  %v4172_v29 = vld [vmem:[%s5729_s3 + $0xb0] sm:$0xff]   ;;  %v4176_v33 = vld [vmem:[%s5729_s3 + $0xb8] sm:$0xff]  }
  0x8d   : > { %3747 = vmatpush3.bf16.msra.mxu1 %v4156_v13  ;;  %3636 = vmatprep.subr.bf16.mxu0 %v4157_v14  ;;  %v4177_v34 = vld [vmem:[%s4947_s30] ss:$16 sps:$4 sm:$0xff]   ;;  %v4179_v35 = vld [vmem:[%s4947_s30 + $0x4] ss:$16 sps:$4 sm:$0xff]   ;;  %v4180_v36 = vld [vmem:[%s4947_s30 + $0x8] ss:$16 sps:$4 sm:$0xff]  }
  0x8e   : > { %3748 = vmatprep.subr.bf16.mxu1 %v4158_v15  ;;  %v4182_v37 = vld [vmem:[%s4947_s30 + $0xc] ss:$16 sps:$4 sm:$0xff]   ;;  %1058 = vmatprep.mubr.bf16.mxu0 %v4179_v35  ;;  %v4183_v38 = vld [vmem:[%s4947_s30 + $0x24] ss:$16 sps:$4 sm:$0xff]   ;;  %v4187_v40 = vld [vmem:[%s4947_s30 + $0x20] ss:$16 sps:$4 sm:$0xff]  }
  0x8f   : > { %1219 = vmatprep.mubr.bf16.mxu1 %v4182_v37  ;;  %v4185_v39 = vld [vmem:[%s4947_s30 + $0x2c] ss:$16 sps:$4 sm:$0xff]   ;;  %v4188_v41 = vld [vmem:[%s4947_s30 + $0x28] ss:$16 sps:$4 sm:$0xff]   ;;  %v4189_v42 = vld [vmem:[%s4947_s30 + $0x44] ss:$16 sps:$4 sm:$0xff]  }
  0x90   : > { %3637 = vmatpush3.bf16.msra.mxu0 %v4159_v16  ;;  %v4191_v43 = vld [vmem:[%s4947_s30 + $0x4c] ss:$16 sps:$4 sm:$0xff]   ;;  %v4193_v44 = vld [vmem:[%s4947_s30 + $0x40] ss:$16 sps:$4 sm:$0xff]   ;;  %v4194_v45 = vld [vmem:[%s4947_s30 + $0x48] ss:$16 sps:$4 sm:$0xff]  }
  0x91   : > { %3749 = vmatpush3.bf16.msra.mxu1 %v4160_v17  ;;  %3638 = vmatprep.subr.bf16.mxu0 %v4161_v18  ;;  %v4195_v46 = vld [vmem:[%s4947_s30 + $0x64] ss:$16 sps:$4 sm:$0xff]   ;;  %v4197_v47 = vld [vmem:[%s4947_s30 + $0x6c] ss:$16 sps:$4 sm:$0xff]   ;;  %v4199_v48 = vld [vmem:[%s4947_s30 + $0x60] ss:$16 sps:$4 sm:$0xff]  }
  0x92   : > { %3750 = vmatprep.subr.bf16.mxu1 %v4162_v19  ;;  %v4200_v49 = vld [vmem:[%s4947_s30 + $0x68] ss:$16 sps:$4 sm:$0xff]   ;;  %v4201_v50 = vld [vmem:[%s4947_s30 + $0x84] ss:$16 sps:$4 sm:$0xff]   ;;  %v4203_v51 = vld [vmem:[%s4947_s30 + $0x8c] ss:$16 sps:$4 sm:$0xff]  }
  0x93   : > { %v4205_v52 = vld [vmem:[%s4947_s30 + $0x80] ss:$16 sps:$4 sm:$0xff]   ;;  %v4206_v53 = vld [vmem:[%s4947_s30 + $0x88] ss:$16 sps:$4 sm:$0xff]   ;;  %v4207_v54 = vld [vmem:[%s4947_s30 + $0xa4] ss:$16 sps:$4 sm:$0xff]  }
  0x94   : > { %3639 = vmatpush3.bf16.msra.mxu0 %v4163_v20  ;;  %v4209_v55 = vld [vmem:[%s4947_s30 + $0xac] ss:$16 sps:$4 sm:$0xff]   ;;  %v4211_v56 = vld [vmem:[%s4947_s30 + $0xa0] ss:$16 sps:$4 sm:$0xff]   ;;  %v4212_v57 = vld [vmem:[%s4947_s30 + $0xa8] ss:$16 sps:$4 sm:$0xff]  }
  0x95   : > { %3751 = vmatpush3.bf16.msra.mxu1 %v4164_v21  ;;  %3640 = vmatprep.subr.bf16.mxu0 %v4165_v22  ;;  %v4213_v58 = vld [vmem:[%s4947_s30 + $0xc4] ss:$16 sps:$4 sm:$0xff]   ;;  %v4215_v59 = vld [vmem:[%s4947_s30 + $0xcc] ss:$16 sps:$4 sm:$0xff]   ;;  %v4217_v60 = vld [vmem:[%s4947_s30 + $0xc0] ss:$16 sps:$4 sm:$0xff]  }
  0x96   : > { %3752 = vmatprep.subr.bf16.mxu1 %v4166_v23  ;;  %v4218_v61 = vld [vmem:[%s4947_s30 + $0xc8] ss:$16 sps:$4 sm:$0xff]   ;;  %v4219_v62 = vld [vmem:[%s4947_s30 + $0xe4] ss:$16 sps:$4 sm:$0xff]   ;;  %v4221_v63 = vld [vmem:[%s4947_s30 + $0xec] ss:$16 sps:$4 sm:$0xff]  }
  0x97   : > { %v4223_v0 = vld [vmem:[%s4947_s30 + $0xe0] ss:$16 sps:$4 sm:$0xff]   ;;  %v4224_v1 = vld [vmem:[%s4947_s30 + $0xe8] ss:$16 sps:$4 sm:$0xff]   ;;  %v4225_v2 = vld [vmem:[%s4947_s30 + $0x104] ss:$16 sps:$4 sm:$0xff]  }
  0x98   : > { %3641 = vmatpush3.bf16.msra.mxu0 %v4167_v24  ;;  %v4227_v3 = vld [vmem:[%s4947_s30 + $0x10c] ss:$16 sps:$4 sm:$0xff]   ;;  %v4229_v4 = vld [vmem:[%s4947_s30 + $0x100] ss:$16 sps:$4 sm:$0xff]   ;;  %v4230_v5 = vld [vmem:[%s4947_s30 + $0x108] ss:$16 sps:$4 sm:$0xff]  }
  0x99   : > { %3753 = vmatpush3.bf16.msra.mxu1 %v4168_v25  ;;  %3642 = vmatprep.subr.bf16.mxu0 %v4169_v26  ;;  %v4231_v6 = vld [vmem:[%s4947_s30 + $0x124] ss:$16 sps:$4 sm:$0xff]   ;;  %v4233_v7 = vld [vmem:[%s4947_s30 + $0x12c] ss:$16 sps:$4 sm:$0xff]   ;;  %v4235_v8 = vld [vmem:[%s4947_s30 + $0x120] ss:$16 sps:$4 sm:$0xff]  }
  0x9a   : > { %3754 = vmatprep.subr.bf16.mxu1 %v4170_v27  ;;  %v4236_v9 = vld [vmem:[%s4947_s30 + $0x128] ss:$16 sps:$4 sm:$0xff]   ;;  %v4237_v10 = vld [vmem:[%s4947_s30 + $0x144] ss:$16 sps:$4 sm:$0xff]   ;;  %v4239_v11 = vld [vmem:[%s4947_s30 + $0x14c] ss:$16 sps:$4 sm:$0xff]  }
  0x9b   : > { %v4241_v12 = vld [vmem:[%s4947_s30 + $0x140] ss:$16 sps:$4 sm:$0xff]   ;;  %v4242_v13 = vld [vmem:[%s4947_s30 + $0x148] ss:$16 sps:$4 sm:$0xff]   ;;  %v4243_v14 = vld [vmem:[%s4947_s30 + $0x164] ss:$16 sps:$4 sm:$0xff]  }
  0x9c   : > { %3643 = vmatpush3.bf16.msra.mxu0 %v4171_v28  ;;  %v4245_v15 = vld [vmem:[%s4947_s30 + $0x16c] ss:$16 sps:$4 sm:$0xff]   ;;  %v4247_v16 = vld [vmem:[%s4947_s30 + $0x160] ss:$16 sps:$4 sm:$0xff]   ;;  %v4248_v17 = vld [vmem:[%s4947_s30 + $0x168] ss:$16 sps:$4 sm:$0xff]  }
  0x9d   : > { %3755 = vmatpush3.bf16.msra.mxu1 %v4172_v29  ;;  %3644 = vmatprep.subr.bf16.mxu0 %v4173_v30  ;;  %v4249_v18 = vld [vmem:[%s4947_s30 + $0x184] ss:$16 sps:$4 sm:$0xff]   ;;  %v4251_v19 = vld [vmem:[%s4947_s30 + $0x18c] ss:$16 sps:$4 sm:$0xff]   ;;  %v4253_v20 = vld [vmem:[%s4947_s30 + $0x180] ss:$16 sps:$4 sm:$0xff]  }
  0x9e   : > { %3756 = vmatprep.subr.bf16.mxu1 %v4174_v31  ;;  %v4254_v21 = vld [vmem:[%s4947_s30 + $0x188] ss:$16 sps:$4 sm:$0xff]   ;;  %v4255_v22 = vld [vmem:[%s4947_s30 + $0x1a4] ss:$16 sps:$4 sm:$0xff]   ;;  %v4257_v23 = vld [vmem:[%s4947_s30 + $0x1ac] ss:$16 sps:$4 sm:$0xff]  }
  0x9f   : > { %v4259_v24 = vld [vmem:[%s4947_s30 + $0x1a0] ss:$16 sps:$4 sm:$0xff]   ;;  %v4260_v25 = vld [vmem:[%s4947_s30 + $0x1a8] ss:$16 sps:$4 sm:$0xff]   ;;  %v4261_v26 = vld [vmem:[%s4947_s30 + $0x1c4] ss:$16 sps:$4 sm:$0xff]  }
  0xa0   : > { %3645 = vmatpush3.bf16.msra.mxu0 %v4175_v32  ;;  %v4263_v27 = vld [vmem:[%s4947_s30 + $0x1cc] ss:$16 sps:$4 sm:$0xff]   ;;  %v4265_v28 = vld [vmem:[%s4947_s30 + $0x1c0] ss:$16 sps:$4 sm:$0xff]   ;;  %v4266_v29 = vld [vmem:[%s4947_s30 + $0x1c8] ss:$16 sps:$4 sm:$0xff]  }
  0xa1   : > { %3757 = vmatpush3.bf16.msra.mxu1 %v4176_v33  ;;  %v4267_v30 = vld [vmem:[%s4947_s30 + $0x1e4] ss:$16 sps:$4 sm:$0xff]   ;;  %v4269_v31 = vld [vmem:[%s4947_s30 + $0x1ec] ss:$16 sps:$4 sm:$0xff]   ;;  %v4271_v32 = vld [vmem:[%s4947_s30 + $0x1e0] ss:$16 sps:$4 sm:$0xff]  }
  0xa2   : > { %v4272_v33 = vld [vmem:[%s4947_s30 + $0x1e8] ss:$16 sps:$4 sm:$0xff]  }
  0xa3   : > { %1059 = vmatmul.mubr.bf16.vlgmr.msra.gmra.mrb[0].mxu0 %v4177_v34 }
  0xa4   : > { %1220 = vmatmul.mubr.bf16.vlgmr.msra.gmra.mrb[0].mxu1 %v4180_v36  ;;  %1066 = vmatprep.mubr.bf16.mxu0 %v4183_v38 }
  0xa5   : > { %1227 = vmatprep.mubr.bf16.mxu1 %v4185_v39 }
  0xab   : > { %1067 = vmatmul.mubr.bf16.gmra.mrb[4].mxu0 %v4187_v40 }
  0xac   : > { %1228 = vmatmul.mubr.bf16.gmra.mrb[4].mxu1 %v4188_v41  ;;  %1074 = vmatprep.mubr.bf16.mxu0 %v4189_v42 }
  0xad   : > { %1235 = vmatprep.mubr.bf16.mxu1 %v4191_v43 }
  0xb3   : > { %1075 = vmatmul.mubr.bf16.gmra.mrb[8].mxu0 %v4193_v44 }
  0xb4   : > { %1236 = vmatmul.mubr.bf16.gmra.mrb[8].mxu1 %v4194_v45  ;;  %1082 = vmatprep.mubr.bf16.mxu0 %v4195_v46 }
  0xb5   : > { %1243 = vmatprep.mubr.bf16.mxu1 %v4197_v47 }
  0xbb   : > { %1083 = vmatmul.mubr.bf16.gmra.mrb[12].mxu0 %v4199_v48 }
  0xbc   : > { %1244 = vmatmul.mubr.bf16.gmra.mrb[12].mxu1 %v4200_v49  ;;  %1090 = vmatprep.mubr.bf16.mxu0 %v4201_v50 }
  0xbd   : > { %1251 = vmatprep.mubr.bf16.mxu1 %v4203_v51 }
  0xc3   : > { %1091 = vmatmul.mubr.bf16.gmra.mrb[16].mxu0 %v4205_v52 }
  0xc4   : > { %1252 = vmatmul.mubr.bf16.gmra.mrb[16].mxu1 %v4206_v53  ;;  %1098 = vmatprep.mubr.bf16.mxu0 %v4207_v54 }
  0xc5   : > { %1259 = vmatprep.mubr.bf16.mxu1 %v4209_v55 }
  0xcb   : > { %1099 = vmatmul.mubr.bf16.gmra.mrb[20].mxu0 %v4211_v56 }
  0xcc   : > { %1260 = vmatmul.mubr.bf16.gmra.mrb[20].mxu1 %v4212_v57  ;;  %1106 = vmatprep.mubr.bf16.mxu0 %v4213_v58 }
  0xcd   : > { %1267 = vmatprep.mubr.bf16.mxu1 %v4215_v59 }
  0xd3   : > { %1107 = vmatmul.mubr.bf16.gmra.mrb[24].mxu0 %v4217_v60 }
  0xd4   : > { %1268 = vmatmul.mubr.bf16.gmra.mrb[24].mxu1 %v4218_v61  ;;  %1114 = vmatprep.mubr.bf16.mxu0 %v4219_v62 }
  0xd5   : > { %1275 = vmatprep.mubr.bf16.mxu1 %v4221_v63 }
  0xdb   : > { %1115 = vmatmul.mubr.bf16.gmra.mrb[28].mxu0 %v4223_v0 }
  0xdc   : > { %1276 = vmatmul.mubr.bf16.gmra.mrb[28].mxu1 %v4224_v1  ;;  %1122 = vmatprep.mubr.bf16.mxu0 %v4225_v2 }
  0xdd   : > { %1283 = vmatprep.mubr.bf16.mxu1 %v4227_v3 }
  0xe3   : > { %1123 = vmatmul.mubr.bf16.gmra.mrb[32].mxu0 %v4229_v4 }
  0xe4   : > { %1284 = vmatmul.mubr.bf16.gmra.mrb[32].mxu1 %v4230_v5  ;;  %1130 = vmatprep.mubr.bf16.mxu0 %v4231_v6 }
  0xe5   : > { %1291 = vmatprep.mubr.bf16.mxu1 %v4233_v7 }
  0xeb   : > { %1131 = vmatmul.mubr.bf16.gmra.mrb[36].mxu0 %v4235_v8 }
  0xec   : > { %1292 = vmatmul.mubr.bf16.gmra.mrb[36].mxu1 %v4236_v9  ;;  %1138 = vmatprep.mubr.bf16.mxu0 %v4237_v10 }
  0xed   : > { %1299 = vmatprep.mubr.bf16.mxu1 %v4239_v11 }
  0xf3   : > { %1139 = vmatmul.mubr.bf16.gmra.mrb[40].mxu0 %v4241_v12 }
  0xf4   : > { %1300 = vmatmul.mubr.bf16.gmra.mrb[40].mxu1 %v4242_v13  ;;  %1146 = vmatprep.mubr.bf16.mxu0 %v4243_v14 }
  0xf5   : > { %1307 = vmatprep.mubr.bf16.mxu1 %v4245_v15 }
  0xfb   : > { %1147 = vmatmul.mubr.bf16.gmra.mrb[44].mxu0 %v4247_v16 }
  0xfc   : > { %1308 = vmatmul.mubr.bf16.gmra.mrb[44].mxu1 %v4248_v17  ;;  %1154 = vmatprep.mubr.bf16.mxu0 %v4249_v18 }
  0xfd   : > { %1315 = vmatprep.mubr.bf16.mxu1 %v4251_v19 }
 0x103   : > { %1155 = vmatmul.mubr.bf16.gmra.mrb[48].mxu0 %v4253_v20 }
 0x104   : > { %1316 = vmatmul.mubr.bf16.gmra.mrb[48].mxu1 %v4254_v21  ;;  %1162 = vmatprep.mubr.bf16.mxu0 %v4255_v22 }
 0x105   : > { %1323 = vmatprep.mubr.bf16.mxu1 %v4257_v23 }
 0x10b   : > { %1163 = vmatmul.mubr.bf16.gmra.mrb[52].mxu0 %v4259_v24 }
 0x10c   : > { %1324 = vmatmul.mubr.bf16.gmra.mrb[52].mxu1 %v4260_v25  ;;  %1170 = vmatprep.mubr.bf16.mxu0 %v4261_v26 }
 0x10d   : > { %1331 = vmatprep.mubr.bf16.mxu1 %v4263_v27 }
 0x113   : > { %1171 = vmatmul.mubr.bf16.gmra.mrb[56].mxu0 %v4265_v28 }
 0x114   : > { %1332 = vmatmul.mubr.bf16.gmra.mrb[56].mxu1 %v4266_v29  ;;  %1178 = vmatprep.mubr.bf16.mxu0 %v4267_v30 }
 0x115   : > { %1339 = vmatprep.mubr.bf16.mxu1 %v4269_v31 }
 0x11b   : > { %1179 = vmatmul.mubr.bf16.gmra.mrb[60].mxu0 %v4271_v32 }
 0x11c   : > { %1340 = vmatmul.mubr.bf16.gmra.mrb[60].mxu1 %v4272_v33 }
 0x176   : > { %v3646_v34 = vpop.f32.mrb[0].mxu0 }
 0x177   : > { %v3758_v35 = vpop.f32.mrb[0].mxu1  ;;  %v3647_v36 = vpop.f32.mrb[1].mxu0 }
 0x178   : > { %v3648_v37 = vadd.f32 %v3647_v36, %v3646_v34  ;;  %v3759_v38 = vpop.f32.mrb[1].mxu1  ;;  %v3649_v39 = vpop.f32.mrb[2].mxu0 }
 0x179   : > { %v3760_v40 = vadd.f32 %v3759_v38, %v3758_v35  ;;  %v3761_v41 = vpop.f32.mrb[2].mxu1  ;;  %v3650_v42 = vpop.f32.mrb[3].mxu0 }
 0x17a   : > { %v3651_v43 = vadd.f32 %v3650_v42, %v3649_v39  ;;  %v3762_v44 = vpop.f32.mrb[3].mxu1 }
 0x17b   : > { %v1222_v45 = vadd.f32 %v3760_v40, %v3648_v37  ;;  %v3763_v46 = vadd.f32 %v3762_v44, %v3761_v41 }
 0x17d   : > { %1349 = vst.msk [vmem:[#allocation2] sm:$0xff] %vm1348_vm0, %v1222_v45  ;;  %v1225_v47 = vadd.f32 %v3763_v46, %v3651_v43 }
 0x17e   : > { %v3652_v48 = vpop.f32.mrb[4].mxu0 }
 0x17f   : > { %1350 = vst.msk [vmem:[#allocation2 + $0x8] sm:$0xff] %vm1348_vm0, %v1225_v47  ;;  %v3764_v49 = vpop.f32.mrb[4].mxu1  ;;  %v3653_v50 = vpop.f32.mrb[5].mxu0 }
 0x180   : > { %v3654_v51 = vadd.f32 %v3653_v50, %v3652_v48  ;;  %v3765_v52 = vpop.f32.mrb[5].mxu1  ;;  %v3655_v53 = vpop.f32.mrb[6].mxu0 }
 0x181   : > { %v3766_v54 = vadd.f32 %v3765_v52, %v3764_v49  ;;  %v3767_v55 = vpop.f32.mrb[6].mxu1  ;;  %v3656_v56 = vpop.f32.mrb[7].mxu0 }
 0x182   : > { %v3657_v57 = vadd.f32 %v3656_v56, %v3655_v53  ;;  %v3768_v58 = vpop.f32.mrb[7].mxu1 }
 0x183   : > { %v1230_v59 = vadd.f32 %v3766_v54, %v3654_v51  ;;  %v3769_v60 = vadd.f32 %v3768_v58, %v3767_v55 }
 0x185   : > { %1351 = vst.msk [vmem:[#allocation2 + $0x10] sm:$0xff] %vm1348_vm0, %v1230_v59  ;;  %v1233_v61 = vadd.f32 %v3769_v60, %v3657_v57 }
 0x186   : > { %v3658_v62 = vpop.f32.mrb[8].mxu0 }
 0x187   : > { %1352 = vst.msk [vmem:[#allocation2 + $0x18] sm:$0xff] %vm1348_vm0, %v1233_v61  ;;  %v3770_v63 = vpop.f32.mrb[8].mxu1  ;;  %v3659_v0 = vpop.f32.mrb[9].mxu0 }
 0x188   : > { %v3660_v1 = vadd.f32 %v3659_v0, %v3658_v62  ;;  %v3771_v2 = vpop.f32.mrb[9].mxu1  ;;  %v3661_v3 = vpop.f32.mrb[10].mxu0 }
 0x189   : > { %v3772_v4 = vadd.f32 %v3771_v2, %v3770_v63  ;;  %v3773_v5 = vpop.f32.mrb[10].mxu1  ;;  %v3662_v6 = vpop.f32.mrb[11].mxu0 }
 0x18a   : > { %v3663_v7 = vadd.f32 %v3662_v6, %v3661_v3  ;;  %v3774_v8 = vpop.f32.mrb[11].mxu1 }
 0x18b   : > { %v1238_v9 = vadd.f32 %v3772_v4, %v3660_v1  ;;  %v3775_v10 = vadd.f32 %v3774_v8, %v3773_v5 }
 0x18d   : > { %1353 = vst.msk [vmem:[#allocation2 + $0x20] sm:$0xff] %vm1348_vm0, %v1238_v9  ;;  %v1241_v11 = vadd.f32 %v3775_v10, %v3663_v7 }
 0x18e   : > { %v3664_v12 = vpop.f32.mrb[12].mxu0 }
 0x18f   : > { %1354 = vst.msk [vmem:[#allocation2 + $0x28] sm:$0xff] %vm1348_vm0, %v1241_v11  ;;  %v3776_v13 = vpop.f32.mrb[12].mxu1  ;;  %v3665_v14 = vpop.f32.mrb[13].mxu0 }
 0x190   : > { %v3666_v15 = vadd.f32 %v3665_v14, %v3664_v12  ;;  %v3777_v16 = vpop.f32.mrb[13].mxu1  ;;  %v3667_v17 = vpop.f32.mrb[14].mxu0 }
 0x191   : > { %v3778_v18 = vadd.f32 %v3777_v16, %v3776_v13  ;;  %v3779_v19 = vpop.f32.mrb[14].mxu1  ;;  %v3668_v20 = vpop.f32.mrb[15].mxu0 }
 0x192   : > { %v3669_v21 = vadd.f32 %v3668_v20, %v3667_v17  ;;  %v3780_v22 = vpop.f32.mrb[15].mxu1 }
 0x193   : > { %v1246_v23 = vadd.f32 %v3778_v18, %v3666_v15  ;;  %v3781_v24 = vadd.f32 %v3780_v22, %v3779_v19 }
 0x195   : > { %1355 = vst.msk [vmem:[#allocation2 + $0x30] sm:$0xff] %vm1348_vm0, %v1246_v23  ;;  %v1249_v25 = vadd.f32 %v3781_v24, %v3669_v21 }
 0x196   : > { %v3670_v26 = vpop.f32.mrb[16].mxu0 }
 0x197   : > { %1356 = vst.msk [vmem:[#allocation2 + $0x38] sm:$0xff] %vm1348_vm0, %v1249_v25  ;;  %v3782_v27 = vpop.f32.mrb[16].mxu1  ;;  %v3671_v28 = vpop.f32.mrb[17].mxu0 }
 0x198   : > { %v3672_v29 = vadd.f32 %v3671_v28, %v3670_v26  ;;  %v3783_v30 = vpop.f32.mrb[17].mxu1  ;;  %v3673_v31 = vpop.f32.mrb[18].mxu0 }
 0x199   : > { %v3784_v32 = vadd.f32 %v3783_v30, %v3782_v27  ;;  %v3785_v33 = vpop.f32.mrb[18].mxu1  ;;  %v3674_v34 = vpop.f32.mrb[19].mxu0 }
 0x19a   : > { %v3675_v35 = vadd.f32 %v3674_v34, %v3673_v31  ;;  %v3786_v36 = vpop.f32.mrb[19].mxu1 }
 0x19b   : > { %v1254_v37 = vadd.f32 %v3784_v32, %v3672_v29  ;;  %v3787_v38 = vadd.f32 %v3786_v36, %v3785_v33 }
 0x19d   : > { %1357 = vst.msk [vmem:[#allocation2 + $0x40] sm:$0xff] %vm1348_vm0, %v1254_v37  ;;  %v1257_v39 = vadd.f32 %v3787_v38, %v3675_v35 }
 0x19e   : > { %v3676_v40 = vpop.f32.mrb[20].mxu0 }
 0x19f   : > { %1358 = vst.msk [vmem:[#allocation2 + $0x48] sm:$0xff] %vm1348_vm0, %v1257_v39  ;;  %v3788_v41 = vpop.f32.mrb[20].mxu1  ;;  %v3677_v42 = vpop.f32.mrb[21].mxu0 }
 0x1a0   : > { %v3678_v43 = vadd.f32 %v3677_v42, %v3676_v40  ;;  %v3789_v44 = vpop.f32.mrb[21].mxu1  ;;  %v3679_v45 = vpop.f32.mrb[22].mxu0 }
 0x1a1   : > { %v3790_v46 = vadd.f32 %v3789_v44, %v3788_v41  ;;  %v3791_v47 = vpop.f32.mrb[22].mxu1  ;;  %v3680_v48 = vpop.f32.mrb[23].mxu0 }
 0x1a2   : > { %v3681_v49 = vadd.f32 %v3680_v48, %v3679_v45  ;;  %v3792_v50 = vpop.f32.mrb[23].mxu1 }
 0x1a3   : > { %v1262_v51 = vadd.f32 %v3790_v46, %v3678_v43  ;;  %v3793_v52 = vadd.f32 %v3792_v50, %v3791_v47 }
 0x1a5   : > { %1359 = vst.msk [vmem:[#allocation2 + $0x50] sm:$0xff] %vm1348_vm0, %v1262_v51  ;;  %v1265_v53 = vadd.f32 %v3793_v52, %v3681_v49 }
 0x1a6   : > { %v3682_v54 = vpop.f32.mrb[24].mxu0 }
 0x1a7   : > { %1360 = vst.msk [vmem:[#allocation2 + $0x58] sm:$0xff] %vm1348_vm0, %v1265_v53  ;;  %v3794_v55 = vpop.f32.mrb[24].mxu1  ;;  %v3683_v56 = vpop.f32.mrb[25].mxu0 }
 0x1a8   : > { %v3684_v57 = vadd.f32 %v3683_v56, %v3682_v54  ;;  %v3795_v58 = vpop.f32.mrb[25].mxu1  ;;  %v3685_v59 = vpop.f32.mrb[26].mxu0 }
 0x1a9   : > { %v3796_v60 = vadd.f32 %v3795_v58, %v3794_v55  ;;  %v3797_v61 = vpop.f32.mrb[26].mxu1  ;;  %v3686_v62 = vpop.f32.mrb[27].mxu0 }
 0x1aa   : > { %v3687_v63 = vadd.f32 %v3686_v62, %v3685_v59  ;;  %v3798_v0 = vpop.f32.mrb[27].mxu1 }
 0x1ab   : > { %v1270_v1 = vadd.f32 %v3796_v60, %v3684_v57  ;;  %v3799_v2 = vadd.f32 %v3798_v0, %v3797_v61 }
 0x1ad   : > { %1361 = vst.msk [vmem:[#allocation2 + $0x60] sm:$0xff] %vm1348_vm0, %v1270_v1  ;;  %v1273_v3 = vadd.f32 %v3799_v2, %v3687_v63 }
 0x1ae   : > { %v3688_v4 = vpop.f32.mrb[28].mxu0 }
 0x1af   : > { %1362 = vst.msk [vmem:[#allocation2 + $0x68] sm:$0xff] %vm1348_vm0, %v1273_v3  ;;  %v3800_v5 = vpop.f32.mrb[28].mxu1  ;;  %v3689_v6 = vpop.f32.mrb[29].mxu0 }
 0x1b0   : > { %v3690_v7 = vadd.f32 %v3689_v6, %v3688_v4  ;;  %v3801_v8 = vpop.f32.mrb[29].mxu1  ;;  %v3691_v9 = vpop.f32.mrb[30].mxu0 }
 0x1b1   : > { %v3802_v10 = vadd.f32 %v3801_v8, %v3800_v5  ;;  %v3803_v11 = vpop.f32.mrb[30].mxu1  ;;  %v3692_v12 = vpop.f32.mrb[31].mxu0 }
 0x1b2   : > { %v3693_v13 = vadd.f32 %v3692_v12, %v3691_v9  ;;  %v3804_v14 = vpop.f32.mrb[31].mxu1 }
 0x1b3   : > { %v1278_v15 = vadd.f32 %v3802_v10, %v3690_v7  ;;  %v3805_v16 = vadd.f32 %v3804_v14, %v3803_v11 }
 0x1b5   : > { %1363 = vst.msk [vmem:[#allocation2 + $0x70] sm:$0xff] %vm1348_vm0, %v1278_v15  ;;  %v1281_v17 = vadd.f32 %v3805_v16, %v3693_v13 }
 0x1b6   : > { %v3694_v18 = vpop.f32.mrb[32].mxu0 }
 0x1b7   : > { %1364 = vst.msk [vmem:[#allocation2 + $0x78] sm:$0xff] %vm1348_vm0, %v1281_v17  ;;  %v3806_v19 = vpop.f32.mrb[32].mxu1  ;;  %v3695_v20 = vpop.f32.mrb[33].mxu0 }
 0x1b8   : > { %v3696_v21 = vadd.f32 %v3695_v20, %v3694_v18  ;;  %v3807_v22 = vpop.f32.mrb[33].mxu1  ;;  %v3697_v23 = vpop.f32.mrb[34].mxu0 }
 0x1b9   : > { %v3808_v24 = vadd.f32 %v3807_v22, %v3806_v19  ;;  %v3809_v25 = vpop.f32.mrb[34].mxu1  ;;  %v3698_v26 = vpop.f32.mrb[35].mxu0 }
 0x1ba   : > { %v3699_v27 = vadd.f32 %v3698_v26, %v3697_v23  ;;  %v3810_v28 = vpop.f32.mrb[35].mxu1 }
 0x1bb   : > { %v1286_v29 = vadd.f32 %v3808_v24, %v3696_v21  ;;  %v3811_v30 = vadd.f32 %v3810_v28, %v3809_v25 }
 0x1bd   : > { %1365 = vst.msk [vmem:[#allocation2 + $0x80] sm:$0xff] %vm1348_vm0, %v1286_v29  ;;  %v1289_v31 = vadd.f32 %v3811_v30, %v3699_v27 }
 0x1be   : > { %v3700_v32 = vpop.f32.mrb[36].mxu0 }
 0x1bf   : > { %1366 = vst.msk [vmem:[#allocation2 + $0x88] sm:$0xff] %vm1348_vm0, %v1289_v31  ;;  %v3812_v33 = vpop.f32.mrb[36].mxu1  ;;  %v3701_v34 = vpop.f32.mrb[37].mxu0 }
 0x1c0   : > { %v3702_v35 = vadd.f32 %v3701_v34, %v3700_v32  ;;  %v3813_v36 = vpop.f32.mrb[37].mxu1  ;;  %v3703_v37 = vpop.f32.mrb[38].mxu0 }
 0x1c1   : > { %v3814_v38 = vadd.f32 %v3813_v36, %v3812_v33  ;;  %v3815_v39 = vpop.f32.mrb[38].mxu1  ;;  %v3704_v40 = vpop.f32.mrb[39].mxu0 }
 0x1c2   : > { %v3705_v41 = vadd.f32 %v3704_v40, %v3703_v37  ;;  %v3816_v42 = vpop.f32.mrb[39].mxu1 }
 0x1c3   : > { %v1294_v43 = vadd.f32 %v3814_v38, %v3702_v35  ;;  %v3817_v44 = vadd.f32 %v3816_v42, %v3815_v39 }
 0x1c5   : > { %1367 = vst.msk [vmem:[#allocation2 + $0x90] sm:$0xff] %vm1348_vm0, %v1294_v43  ;;  %v1297_v45 = vadd.f32 %v3817_v44, %v3705_v41 }
 0x1c6   : > { %v3706_v46 = vpop.f32.mrb[40].mxu0 }
 0x1c7   : > { %1368 = vst.msk [vmem:[#allocation2 + $0x98] sm:$0xff] %vm1348_vm0, %v1297_v45  ;;  %v3818_v47 = vpop.f32.mrb[40].mxu1  ;;  %v3707_v48 = vpop.f32.mrb[41].mxu0 }
 0x1c8   : > { %v3708_v49 = vadd.f32 %v3707_v48, %v3706_v46  ;;  %v3819_v50 = vpop.f32.mrb[41].mxu1  ;;  %v3709_v51 = vpop.f32.mrb[42].mxu0 }
 0x1c9   : > { %v3820_v52 = vadd.f32 %v3819_v50, %v3818_v47  ;;  %v3821_v53 = vpop.f32.mrb[42].mxu1  ;;  %v3710_v54 = vpop.f32.mrb[43].mxu0 }
 0x1ca   : > { %v3711_v55 = vadd.f32 %v3710_v54, %v3709_v51  ;;  %v3822_v56 = vpop.f32.mrb[43].mxu1 }
 0x1cb   : > { %v1302_v57 = vadd.f32 %v3820_v52, %v3708_v49  ;;  %v3823_v58 = vadd.f32 %v3822_v56, %v3821_v53 }
 0x1cd   : > { %1369 = vst.msk [vmem:[#allocation2 + $0xa0] sm:$0xff] %vm1348_vm0, %v1302_v57  ;;  %v1305_v59 = vadd.f32 %v3823_v58, %v3711_v55 }
 0x1ce   : > { %v3712_v60 = vpop.f32.mrb[44].mxu0 }
 0x1cf   : > { %1370 = vst.msk [vmem:[#allocation2 + $0xa8] sm:$0xff] %vm1348_vm0, %v1305_v59  ;;  %v3824_v61 = vpop.f32.mrb[44].mxu1  ;;  %v3713_v62 = vpop.f32.mrb[45].mxu0 }
 0x1d0   : > { %v3714_v63 = vadd.f32 %v3713_v62, %v3712_v60  ;;  %v3825_v0 = vpop.f32.mrb[45].mxu1  ;;  %v3715_v1 = vpop.f32.mrb[46].mxu0 }
 0x1d1   : > { %v3826_v2 = vadd.f32 %v3825_v0, %v3824_v61  ;;  %v3827_v3 = vpop.f32.mrb[46].mxu1  ;;  %v3716_v4 = vpop.f32.mrb[47].mxu0 }
 0x1d2   : > { %v3717_v5 = vadd.f32 %v3716_v4, %v3715_v1  ;;  %v3828_v6 = vpop.f32.mrb[47].mxu1 }
 0x1d3   : > { %v1310_v7 = vadd.f32 %v3826_v2, %v3714_v63  ;;  %v3829_v8 = vadd.f32 %v3828_v6, %v3827_v3 }
 0x1d5   : > { %1371 = vst.msk [vmem:[#allocation2 + $0xb0] sm:$0xff] %vm1348_vm0, %v1310_v7  ;;  %v1313_v9 = vadd.f32 %v3829_v8, %v3717_v5 }
 0x1d6   : > { %v3718_v10 = vpop.f32.mrb[48].mxu0 }
 0x1d7   : > { %1372 = vst.msk [vmem:[#allocation2 + $0xb8] sm:$0xff] %vm1348_vm0, %v1313_v9  ;;  %v3830_v11 = vpop.f32.mrb[48].mxu1  ;;  %v3719_v12 = vpop.f32.mrb[49].mxu0 }
 0x1d8   : > { %v3720_v13 = vadd.f32 %v3719_v12, %v3718_v10  ;;  %v3831_v14 = vpop.f32.mrb[49].mxu1  ;;  %v3721_v15 = vpop.f32.mrb[50].mxu0 }
 0x1d9   : > { %v3832_v16 = vadd.f32 %v3831_v14, %v3830_v11  ;;  %v3833_v17 = vpop.f32.mrb[50].mxu1  ;;  %v3722_v18 = vpop.f32.mrb[51].mxu0 }
 0x1da   : > { %v3723_v19 = vadd.f32 %v3722_v18, %v3721_v15  ;;  %v3834_v20 = vpop.f32.mrb[51].mxu1 }
 0x1db   : > { %v1318_v21 = vadd.f32 %v3832_v16, %v3720_v13  ;;  %v3835_v22 = vadd.f32 %v3834_v20, %v3833_v17 }
 0x1dd   : > { %1373 = vst.msk [vmem:[#allocation2 + $0xc0] sm:$0xff] %vm1348_vm0, %v1318_v21  ;;  %v1321_v23 = vadd.f32 %v3835_v22, %v3723_v19 }
 0x1de   : > { %v3724_v24 = vpop.f32.mrb[52].mxu0 }
 0x1df   : > { %1374 = vst.msk [vmem:[#allocation2 + $0xc8] sm:$0xff] %vm1348_vm0, %v1321_v23  ;;  %v3836_v25 = vpop.f32.mrb[52].mxu1  ;;  %v3725_v26 = vpop.f32.mrb[53].mxu0 }
 0x1e0   : > { %v3726_v27 = vadd.f32 %v3725_v26, %v3724_v24  ;;  %v3837_v28 = vpop.f32.mrb[53].mxu1  ;;  %v3727_v29 = vpop.f32.mrb[54].mxu0 }
 0x1e1   : > { %v3838_v30 = vadd.f32 %v3837_v28, %v3836_v25  ;;  %v3839_v31 = vpop.f32.mrb[54].mxu1  ;;  %v3728_v32 = vpop.f32.mrb[55].mxu0 }
 0x1e2   : > { %v3729_v33 = vadd.f32 %v3728_v32, %v3727_v29  ;;  %v3840_v34 = vpop.f32.mrb[55].mxu1 }
 0x1e3   : > { %v1326_v35 = vadd.f32 %v3838_v30, %v3726_v27  ;;  %v3841_v36 = vadd.f32 %v3840_v34, %v3839_v31 }
 0x1e5   : > { %1375 = vst.msk [vmem:[#allocation2 + $0xd0] sm:$0xff] %vm1348_vm0, %v1326_v35  ;;  %v1329_v37 = vadd.f32 %v3841_v36, %v3729_v33 }
 0x1e6   : > { %v3730_v38 = vpop.f32.mrb[56].mxu0 }
 0x1e7   : > { %1376 = vst.msk [vmem:[#allocation2 + $0xd8] sm:$0xff] %vm1348_vm0, %v1329_v37  ;;  %v3842_v39 = vpop.f32.mrb[56].mxu1  ;;  %v3731_v40 = vpop.f32.mrb[57].mxu0 }
 0x1e8   : > { %v3732_v41 = vadd.f32 %v3731_v40, %v3730_v38  ;;  %v3843_v42 = vpop.f32.mrb[57].mxu1  ;;  %v3733_v43 = vpop.f32.mrb[58].mxu0 }
 0x1e9   : > { %v3844_v44 = vadd.f32 %v3843_v42, %v3842_v39  ;;  %v3845_v45 = vpop.f32.mrb[58].mxu1  ;;  %v3734_v46 = vpop.f32.mrb[59].mxu0 }
 0x1ea   : > { %v3735_v47 = vadd.f32 %v3734_v46, %v3733_v43  ;;  %v3846_v48 = vpop.f32.mrb[59].mxu1 }
 0x1eb   : > { %v1334_v49 = vadd.f32 %v3844_v44, %v3732_v41  ;;  %v3847_v50 = vadd.f32 %v3846_v48, %v3845_v45 }
 0x1ed   : > { %1377 = vst.msk [vmem:[#allocation2 + $0xe0] sm:$0xff] %vm1348_vm0, %v1334_v49  ;;  %v1337_v51 = vadd.f32 %v3847_v50, %v3735_v47 }
 0x1ee   : > { %v3736_v52 = vpop.f32.mrb[60].mxu0 }
 0x1ef   : > { %1378 = vst.msk [vmem:[#allocation2 + $0xe8] sm:$0xff] %vm1348_vm0, %v1337_v51  ;;  %v3848_v53 = vpop.f32.mrb[60].mxu1  ;;  %v3737_v54 = vpop.f32.mrb[61].mxu0 }
 0x1f0   : > { %v3738_v55 = vadd.f32 %v3737_v54, %v3736_v52  ;;  %v3849_v56 = vpop.f32.mrb[61].mxu1  ;;  %v3739_v57 = vpop.f32.mrb[62].mxu0 }
 0x1f1   : > { %v3850_v58 = vadd.f32 %v3849_v56, %v3848_v53  ;;  %v3851_v59 = vpop.f32.mrb[62].mxu1  ;;  %v3740_v60 = vpop.f32.mrb[63].mxu0 }
 0x1f2   : > { %v3741_v61 = vadd.f32 %v3740_v60, %v3739_v57  ;;  %v3852_v62 = vpop.f32.mrb[63].mxu1 }
 0x1f3   : > { %v1342_v63 = vadd.f32 %v3850_v58, %v3738_v55  ;;  %v3853_v0 = vadd.f32 %v3852_v62, %v3851_v59 }
 0x1f5   : > { %1379 = vst.msk [vmem:[#allocation2 + $0xf0] sm:$0xff] %vm1348_vm0, %v1342_v63  ;;  %v1345_v1 = vadd.f32 %v3853_v0, %v3741_v61 }
 0x1f7   : > { %1380 = vst.msk [vmem:[#allocation2 + $0xf8] sm:$0xff] %vm1348_vm0, %v1345_v1 }
 0x1f8 PF: > { %v4273_v2 = vld [vmem:[%s4954_s5 + $0x4] ss:$8 sps:$4 sm:$0xff]   ;;  %v4277_v4 = vld [vmem:[%s4954_s5] ss:$8 sps:$4 sm:$0xff]   ;;  %v4279_v6 = vld [vmem:[%s4954_s5 + $0x14] ss:$8 sps:$4 sm:$0xff]  }
 0x1f9   : > { %v5173_v3 = vld [vmem:[%s4954_s5 + $0x104] ss:$8 sps:$4 sm:$0xff]   ;;  %2199 = vmatprep.subr.bf16.mxu1 %v4273_v2  ;;  %v5177_v5 = vld [vmem:[%s4954_s5 + $0x100] ss:$8 sps:$4 sm:$0xff]   ;;  %v5183_v7 = vld [vmem:[%s4954_s5 + $0x114] ss:$8 sps:$4 sm:$0xff]  }
 0x1fa   : > { %2392 = vmatprep.subr.bf16.mxu0 %v5173_v3  ;;  %2200 = vmatpush1.bf16.msra.mxu1 %v4277_v4  ;;  %v4283_v8 = vld [vmem:[%s4954_s5 + $0x10] ss:$8 sps:$4 sm:$0xff]   ;;  %v4285_v10 = vld [vmem:[%s4954_s5 + $0x24] ss:$8 sps:$4 sm:$0xff]   ;;  %v4289_v12 = vld [vmem:[%s4954_s5 + $0x20] ss:$8 sps:$4 sm:$0xff]  }
 0x1fb   : > { %2393 = vmatpush1.bf16.msra.mxu0 %v5177_v5  ;;  %2201 = vmatprep.subr.bf16.mxu1 %v4279_v6  ;;  %v5187_v9 = vld [vmem:[%s4954_s5 + $0x110] ss:$8 sps:$4 sm:$0xff]   ;;  %v5192_v11 = vld [vmem:[%s4954_s5 + $0x124] ss:$8 sps:$4 sm:$0xff]   ;;  %v5196_v13 = vld [vmem:[%s4954_s5 + $0x120] ss:$8 sps:$4 sm:$0xff]  }
 0x1fc   : > { %2394 = vmatprep.subr.bf16.mxu0 %v5183_v7  ;;  %v4291_v14 = vld [vmem:[%s4954_s5 + $0x34] ss:$8 sps:$4 sm:$0xff]   ;;  %v4295_v16 = vld [vmem:[%s4954_s5 + $0x30] ss:$8 sps:$4 sm:$0xff]   ;;  %v4297_v18 = vld [vmem:[%s4954_s5 + $0x44] ss:$8 sps:$4 sm:$0xff]  }
 0x1fd   : > { %v5202_v15 = vld [vmem:[%s4954_s5 + $0x134] ss:$8 sps:$4 sm:$0xff]   ;;  %v5207_v17 = vld [vmem:[%s4954_s5 + $0x130] ss:$8 sps:$4 sm:$0xff]   ;;  %v5212_v19 = vld [vmem:[%s4954_s5 + $0x144] ss:$8 sps:$4 sm:$0xff]  }
 0x1fe   : > { %2202 = vmatpush1.bf16.msra.mxu1 %v4283_v8  ;;  %v4301_v20 = vld [vmem:[%s4954_s5 + $0x40] ss:$8 sps:$4 sm:$0xff]   ;;  %v4303_v22 = vld [vmem:[%s4954_s5 + $0x54] ss:$8 sps:$4 sm:$0xff]   ;;  %v4307_v24 = vld [vmem:[%s4954_s5 + $0x50] ss:$8 sps:$4 sm:$0xff]  }
 0x1ff   : > { %2395 = vmatpush1.bf16.msra.mxu0 %v5187_v9  ;;  %2203 = vmatprep.subr.bf16.mxu1 %v4285_v10  ;;  %v5216_v21 = vld [vmem:[%s4954_s5 + $0x140] ss:$8 sps:$4 sm:$0xff]   ;;  %v5222_v23 = vld [vmem:[%s4954_s5 + $0x154] ss:$8 sps:$4 sm:$0xff]   ;;  %v5227_v25 = vld [vmem:[%s4954_s5 + $0x150] ss:$8 sps:$4 sm:$0xff]  }
 0x200   : > { %2396 = vmatprep.subr.bf16.mxu0 %v5192_v11  ;;  %v4309_v26 = vld [vmem:[%s4954_s5 + $0x64] ss:$8 sps:$4 sm:$0xff]   ;;  %v4313_v28 = vld [vmem:[%s4954_s5 + $0x60] ss:$8 sps:$4 sm:$0xff]   ;;  %v4315_v30 = vld [vmem:[%s4954_s5 + $0x74] ss:$8 sps:$4 sm:$0xff]  }
 0x201   : > { %v5232_v27 = vld [vmem:[%s4954_s5 + $0x164] ss:$8 sps:$4 sm:$0xff]   ;;  %v5236_v29 = vld [vmem:[%s4954_s5 + $0x160] ss:$8 sps:$4 sm:$0xff]   ;;  %v5242_v31 = vld [vmem:[%s4954_s5 + $0x174] ss:$8 sps:$4 sm:$0xff]  }
 0x202   : > { %2204 = vmatpush1.bf16.msra.mxu1 %v4289_v12  ;;  %v4319_v32 = vld [vmem:[%s4954_s5 + $0x70] ss:$8 sps:$4 sm:$0xff]   ;;  %v4321_v34 = vld [vmem:[%s4954_s5 + $0x84] ss:$8 sps:$4 sm:$0xff]   ;;  %v4325_v36 = vld [vmem:[%s4954_s5 + $0x80] ss:$8 sps:$4 sm:$0xff]  }
 0x203   : > { %2397 = vmatpush1.bf16.msra.mxu0 %v5196_v13  ;;  %2205 = vmatprep.subr.bf16.mxu1 %v4291_v14  ;;  %v5247_v33 = vld [vmem:[%s4954_s5 + $0x170] ss:$8 sps:$4 sm:$0xff]   ;;  %v5252_v35 = vld [vmem:[%s4954_s5 + $0x184] ss:$8 sps:$4 sm:$0xff]   ;;  %v5256_v37 = vld [vmem:[%s4954_s5 + $0x180] ss:$8 sps:$4 sm:$0xff]  }
 0x204   : > { %2398 = vmatprep.subr.bf16.mxu0 %v5202_v15  ;;  %v4327_v38 = vld [vmem:[%s4954_s5 + $0x94] ss:$8 sps:$4 sm:$0xff]   ;;  %v4331_v40 = vld [vmem:[%s4954_s5 + $0x90] ss:$8 sps:$4 sm:$0xff]   ;;  %v4333_v42 = vld [vmem:[%s4954_s5 + $0xa4] ss:$8 sps:$4 sm:$0xff]  }
 0x205   : > { %v5262_v39 = vld [vmem:[%s4954_s5 + $0x194] ss:$8 sps:$4 sm:$0xff]   ;;  %v5267_v41 = vld [vmem:[%s4954_s5 + $0x190] ss:$8 sps:$4 sm:$0xff]   ;;  %v5272_v43 = vld [vmem:[%s4954_s5 + $0x1a4] ss:$8 sps:$4 sm:$0xff]  }
 0x206   : > { %2206 = vmatpush1.bf16.msra.mxu1 %v4295_v16  ;;  %v4337_v44 = vld [vmem:[%s4954_s5 + $0xa0] ss:$8 sps:$4 sm:$0xff]   ;;  %v4339_v46 = vld [vmem:[%s4954_s5 + $0xb4] ss:$8 sps:$4 sm:$0xff]   ;;  %v4343_v48 = vld [vmem:[%s4954_s5 + $0xb0] ss:$8 sps:$4 sm:$0xff]  }
 0x207   : > { %2399 = vmatpush1.bf16.msra.mxu0 %v5207_v17  ;;  %2207 = vmatprep.subr.bf16.mxu1 %v4297_v18  ;;  %v5276_v45 = vld [vmem:[%s4954_s5 + $0x1a0] ss:$8 sps:$4 sm:$0xff]   ;;  %v5282_v47 = vld [vmem:[%s4954_s5 + $0x1b4] ss:$8 sps:$4 sm:$0xff]   ;;  %v5286_v49 = vld [vmem:[%s4954_s5 + $0x1b0] ss:$8 sps:$4 sm:$0xff]  }
 0x208   : > { %2400 = vmatprep.subr.bf16.mxu0 %v5212_v19  ;;  %v4345_v50 = vld [vmem:[%s4954_s5 + $0xc4] ss:$8 sps:$4 sm:$0xff]   ;;  %v4349_v54 = vld [vmem:[%s4954_s5 + $0xc0] ss:$8 sps:$4 sm:$0xff]   ;;  %v4351_v56 = vld [vmem:[%s4954_s5 + $0xd4] ss:$8 sps:$4 sm:$0xff]  }
 0x209   : > { %v4371_v51 = vld [vmem:[%s4947_s30 + $0x4] ss:$16 sps:$4 sm:$0xff]   ;;  %v4374_v53 = vld [vmem:[%s4947_s30 + $0xc] ss:$16 sps:$4 sm:$0xff]   ;;  %v5299_v55 = vld [vmem:[%s4954_s5 + $0x1c0] ss:$8 sps:$4 sm:$0xff]  }
 0x20a   : > { %2208 = vmatpush1.bf16.msra.mxu1 %v4301_v20  ;;  %v5292_v52 = vld [vmem:[%s4954_s5 + $0x1c4] ss:$8 sps:$4 sm:$0xff]   ;;  %2231 = vmatprep.mubr.bf16.mxu1 %v4371_v51  ;;  %v5304_v57 = vld [vmem:[%s4954_s5 + $0x1d4] ss:$8 sps:$4 sm:$0xff]   ;;  %v4355_v58 = vld [vmem:[%s4954_s5 + $0xd0] ss:$8 sps:$4 sm:$0xff]  }
 0x20b   : > { %2401 = vmatpush1.bf16.msra.mxu0 %v5216_v21  ;;  %2209 = vmatprep.subr.bf16.mxu1 %v4303_v22  ;;  %v5308_v59 = vld [vmem:[%s4954_s5 + $0x1d0] ss:$8 sps:$4 sm:$0xff]   ;;  %v4357_v60 = vld [vmem:[%s4954_s5 + $0xe4] ss:$8 sps:$4 sm:$0xff]   ;;  %v4361_v62 = vld [vmem:[%s4954_s5 + $0xe0] ss:$8 sps:$4 sm:$0xff]  }
 0x20c   : > { %2402 = vmatprep.subr.bf16.mxu0 %v5222_v23  ;;  %2424 = vmatprep.mubr.bf16.mxu0 %v4374_v53  ;;  %v5314_v61 = vld [vmem:[%s4954_s5 + $0x1e4] ss:$8 sps:$4 sm:$0xff]   ;;  %v5319_v63 = vld [vmem:[%s4954_s5 + $0x1e0] ss:$8 sps:$4 sm:$0xff]   ;;  %v4363_v0 = vld [vmem:[%s4954_s5 + $0xf4] ss:$8 sps:$4 sm:$0xff]  }
 0x20d   : > { %v5324_v1 = vld [vmem:[%s4954_s5 + $0x1f4] ss:$8 sps:$4 sm:$0xff]   ;;  %v4367_v2 = vld [vmem:[%s4954_s5 + $0xf0] ss:$8 sps:$4 sm:$0xff]   ;;  %vm2595_vm1 = vcmask 130048   ;;  %s5766_s10 = sld [smem:[#allocation15_spill]] }
 0x20e   : > { %2210 = vmatpush1.bf16.msra.mxu1 %v4307_v24  ;;  %v5329_v4 = vld [vmem:[%s4954_s5 + $0x1f0] ss:$8 sps:$4 sm:$0xff]   ;;  %v4377_v6 = vld [vmem:[%s4974_s7 + $0x4] ss:$8 sps:$4 sm:$0xff]   ;;  %s5767_s12 = sld [smem:[#allocation23_spill]]  ;;  %s5768_s0 = sand.u32 1, %s4626_s19  }
 0x20f   : > { %2403 = vmatpush1.bf16.msra.mxu0 %v5227_v25  ;;  %2211 = vmatprep.subr.bf16.mxu1 %v4309_v26  ;;  %v4369_v8 = vld [vmem:[%s4947_s30] ss:$16 sps:$4 sm:$0xff]   ;;  %v4372_v10 = vld [vmem:[%s4947_s30 + $0x8] ss:$16 sps:$4 sm:$0xff]   ;;  %v4378_v14 = vld [vmem:[%s4947_s30 + $0x24] ss:$16 sps:$4 sm:$0xff]  }
 0x210   : > { %2404 = vmatprep.subr.bf16.mxu0 %v5232_v27  ;;  %v4375_v12 = vld [vmem:[%s4974_s7] ss:$8 sps:$4 sm:$0xff]   ;;  %v4380_v16 = vld [vmem:[%s4947_s30 + $0x2c] ss:$16 sps:$4 sm:$0xff]   ;;  %v4390_v24 = vld [vmem:[%s4947_s30 + $0x64] ss:$16 sps:$4 sm:$0xff]  }
 0x211   : > { %v4382_v18 = vld [vmem:[%s4947_s30 + $0x20] ss:$16 sps:$4 sm:$0xff]   ;;  %v4383_v20 = vld [vmem:[%s4947_s30 + $0x28] ss:$16 sps:$4 sm:$0xff]   ;;  %v4386_v22 = vld [vmem:[%s4947_s30 + $0x4c] ss:$16 sps:$4 sm:$0xff]  }
 0x212   : > { %2212 = vmatpush1.bf16.msra.mxu1 %v4313_v28  ;;  %v4398_v26 = vld [vmem:[%s4947_s30 + $0x8c] ss:$16 sps:$4 sm:$0xff]   ;;  %v4408_v28 = vld [vmem:[%s4947_s30 + $0xc4] ss:$16 sps:$4 sm:$0xff]   ;;  %s5650_s26 = scalar_lea.sflag [#allocation5], %s5768_s0  ;;  %p5769_p11 = scmp.ne.s32.totalorder %s5760_s11, 0 }
 0x213   : > { %2405 = vmatpush1.bf16.msra.mxu0 %v5236_v29  ;;  %2213 = vmatprep.subr.bf16.mxu1 %v4315_v30  ;;  %v4412_v30 = vld [vmem:[%s4947_s30 + $0xc0] ss:$16 sps:$4 sm:$0xff]   ;;  %s4683_s14 = smov [#allocation9]  }
 0x214   : > { %2406 = vmatprep.subr.bf16.mxu0 %v5242_v31  ;;  %v1387_v53 = vld [vmem:[#allocation2 + $0x30] sm:$0xff]  ;;  %s4528_s16 = sshll.u32 %s4683_s14, 4  ;;  %s4529_s16 = int_to_ptr.vmem [resolvable:$false] %s4528_s16 }
 0x215   : > { %s4530_s27 = scalar_lea.vmem %s4529_s16, 8192 }
 0x216   : > { %2214 = vmatpush1.bf16.msra.mxu1 %v4319_v32  ;;  %v4414_v32 = vld [vmem:[%s4947_s30 + $0xe4] ss:$16 sps:$4 sm:$0xff]  }
 0x217   : > { %2407 = vmatpush1.bf16.msra.mxu0 %v5247_v33  ;;  %2215 = vmatprep.subr.bf16.mxu1 %v4321_v34  ;;  %v4418_v34 = vld [vmem:[%s4947_s30 + $0xe0] ss:$16 sps:$4 sm:$0xff]  }
 0x218   : > { %2408 = vmatprep.subr.bf16.mxu0 %v5252_v35 }
 0x21a   : > { %2216 = vmatpush1.bf16.msra.mxu1 %v4325_v36  ;;  %v4420_v36 = vld [vmem:[%s4947_s30 + $0x104] ss:$16 sps:$4 sm:$0xff]  }
 0x21b   : > { %2409 = vmatpush1.bf16.msra.mxu0 %v5256_v37  ;;  %2217 = vmatprep.subr.bf16.mxu1 %v4327_v38  ;;  %v1381_v38 = vld [vmem:[#allocation2] sm:$0xff] }
 0x21c   : > { %2410 = vmatprep.subr.bf16.mxu0 %v5262_v39 }
 0x21e   : > { %2218 = vmatpush1.bf16.msra.mxu1 %v4331_v40  ;;  %v4422_v40 = vld [vmem:[%s4947_s30 + $0x100] ss:$16 sps:$4 sm:$0xff]  }
 0x21f   : > { %2411 = vmatpush1.bf16.msra.mxu0 %v5267_v41  ;;  %2219 = vmatprep.subr.bf16.mxu1 %v4333_v42  ;;  %v4423_v42 = vld [vmem:[%s4947_s30 + $0x124] ss:$16 sps:$4 sm:$0xff]  }
 0x220   : > { %2412 = vmatprep.subr.bf16.mxu0 %v5272_v43 }
 0x222   : > { %2220 = vmatpush1.bf16.msra.mxu1 %v4337_v44  ;;  %v1384_v44 = vld [vmem:[#allocation2 + $0x18] sm:$0xff] }
 0x223   : > { %2413 = vmatpush1.bf16.msra.mxu0 %v5276_v45  ;;  %2221 = vmatprep.subr.bf16.mxu1 %v4339_v46 }
 0x224   : > { %2414 = vmatprep.subr.bf16.mxu0 %v5282_v47 }
 0x226   : > { %2222 = vmatpush1.bf16.msra.mxu1 %v4343_v48  ;;  %v1385_v48 = vld [vmem:[#allocation2 + $0x20] sm:$0xff] }
 0x227   : > { %2415 = vmatpush1.bf16.msra.mxu0 %v5286_v49  ;;  %2223 = vmatprep.subr.bf16.mxu1 %v4345_v50  ;;  %v4428_v50 = vld [vmem:[%s4947_s30 + $0x140] ss:$16 sps:$4 sm:$0xff]  }
 0x228   : > { %2416 = vmatprep.subr.bf16.mxu0 %v5292_v52 }
 0x22a   : > { %2224 = vmatpush1.bf16.msra.mxu1 %v4349_v54  ;;  %v1388_v54 = vld [vmem:[#allocation2 + $0x38] sm:$0xff] }
 0x22b   : > { %2417 = vmatpush1.bf16.msra.mxu0 %v5299_v55  ;;  %2225 = vmatprep.subr.bf16.mxu1 %v4351_v56  ;;  %v1416_v56 = vpack.c.bf16 %v1388_v54, %v1387_v53 }
 0x22c   : > { %2418 = vmatprep.subr.bf16.mxu0 %v5304_v57 }
 0x22e   : > { %2226 = vmatpush1.bf16.msra.mxu1 %v4355_v58  ;;  %v1389_v58 = vld [vmem:[#allocation2 + $0x40] sm:$0xff] }
 0x22f   : > { %2419 = vmatpush1.bf16.msra.mxu0 %v5308_v59  ;;  %2227 = vmatprep.subr.bf16.mxu1 %v4357_v60  ;;  %v4434_v60 = vld [vmem:[%s4947_s30 + $0x180] ss:$16 sps:$4 sm:$0xff]  }
 0x230   : > { %2420 = vmatprep.subr.bf16.mxu0 %v5314_v61 }
 0x232   : > { %2228 = vmatpush1.bf16.msra.mxu1 %v4361_v62  ;;  %v4435_v62 = vld [vmem:[%s4947_s30 + $0x1a4] ss:$16 sps:$4 sm:$0xff]  }
 0x233   : > { %2421 = vmatpush1.bf16.msra.mxu0 %v5319_v63  ;;  %2229 = vmatprep.subr.bf16.mxu1 %v4363_v0  ;;  %v1392_v0 = vld [vmem:[#allocation2 + $0x58] sm:$0xff] }
 0x234   : > { %2422 = vmatprep.subr.bf16.mxu0 %v5324_v1 }
 0x236   : > { %2230 = vmatpush1.bf16.msra.mxu1 %v4367_v2 }
 0x237   : > { %2423 = vmatpush1.bf16.msra.mxu0 %v5329_v4  ;;  %3854 = vmatprep.subr.bf16.mxu1 %v5173_v3  ;;  %v4384_v3 = vld [vmem:[%s4947_s30 + $0x44] ss:$16 sps:$4 sm:$0xff]  }
 0x238   : > { %2644 = vmatprep.subr.bf16.mxu0 %v4377_v6  ;;  %v1393_v6 = vld [vmem:[#allocation2 + $0x60] sm:$0xff] }
 0x239   : > { %2232 = vmatmul.mubr.bf16.vlgmr.msra.gmra.mrb[0].mxu1 %v4369_v8  ;;  %v1394_v8 = vld [vmem:[#allocation2 + $0x68] sm:$0xff] }
 0x23a   : > { %2425 = vmatmul.mubr.bf16.vlgmr.msra.gmra.mrb[0].mxu0 %v4372_v10  ;;  %3870 = vmatpush1.bf16.msra.mxu1 %v5177_v5  ;;  %v4388_v5 = vld [vmem:[%s4947_s30 + $0x40] ss:$16 sps:$4 sm:$0xff]  }
 0x23b   : > { %2645 = vmatpush1.bf16.msra.mxu0 %v4375_v12  ;;  %2241 = vmatprep.mubr.bf16.mxu1 %v4378_v14  ;;  %v4440_v10 = vld [vmem:[%s4947_s30 + $0x1c0] ss:$16 sps:$4 sm:$0xff]   ;;  %v1419_v12 = vpack.c.bf16 %v1394_v8, %v1393_v6  ;;  %v4441_v14 = vld [vmem:[%s4947_s30 + $0x1e4] ss:$16 sps:$4 sm:$0xff]  }
 0x23c   : > { %2434 = vmatprep.mubr.bf16.mxu0 %v4380_v16  ;;  %3855 = vmatprep.subr.bf16.mxu1 %v5183_v7  ;;  %v4389_v7 = vld [vmem:[%s4947_s30 + $0x48] ss:$16 sps:$4 sm:$0xff]   ;;  %v1395_v16 = vld [vmem:[#allocation2 + $0x70] sm:$0xff] }
 0x23e   : > { %3871 = vmatpush1.bf16.msra.mxu1 %v5187_v9  ;;  %v4392_v9 = vld [vmem:[%s4947_s30 + $0x6c] ss:$16 sps:$4 sm:$0xff]  }
 0x23f   : > { %3856 = vmatprep.subr.bf16.mxu1 %v5192_v11  ;;  %v4394_v11 = vld [vmem:[%s4947_s30 + $0x60] ss:$16 sps:$4 sm:$0xff]  }
 0x241   : > { %2242 = vmatmul.mubr.bf16.gmra.mrb[4].mxu1 %v4382_v18  ;;  %v1396_v18 = vld [vmem:[#allocation2 + $0x78] sm:$0xff] }
 0x242   : > { %2435 = vmatmul.mubr.bf16.gmra.mrb[4].mxu0 %v4383_v20  ;;  %2251 = vmatprep.mubr.bf16.mxu1 %v4384_v3  ;;  %v4443_v20 = vld [vmem:[%s4947_s30 + $0x1e0] ss:$16 sps:$4 sm:$0xff]   ;;  %v1420_v3 = vpack.c.bf16 %v1396_v18, %v1395_v16 }
 0x243   : > { %2444 = vmatprep.mubr.bf16.mxu0 %v4386_v22  ;;  %3872 = vmatpush1.bf16.msra.mxu1 %v5196_v13  ;;  %v4395_v13 = vld [vmem:[%s4947_s30 + $0x68] ss:$16 sps:$4 sm:$0xff]   ;;  %v4446_v22 = vld [vmem:[%s4947_s30 + $0x10c] ss:$16 sps:$4 sm:$0xff]  }
 0x244   : > { %3857 = vmatprep.subr.bf16.mxu1 %v5202_v15  ;;  %v4396_v15 = vld [vmem:[%s4947_s30 + $0x84] ss:$16 sps:$4 sm:$0xff]  }
 0x247   : > { %3873 = vmatpush1.bf16.msra.mxu1 %v5207_v17  ;;  %v4400_v17 = vld [vmem:[%s4947_s30 + $0x80] ss:$16 sps:$4 sm:$0xff]  }
 0x248   : > { %3858 = vmatprep.subr.bf16.mxu1 %v5212_v19  ;;  %v4401_v19 = vld [vmem:[%s4947_s30 + $0x88] ss:$16 sps:$4 sm:$0xff]  }
 0x249   : > { %2252 = vmatmul.mubr.bf16.gmra.mrb[8].mxu1 %v4388_v5  ;;  %v1397_v5 = vld [vmem:[#allocation2 + $0x80] sm:$0xff] }
 0x24a   : > { %2445 = vmatmul.mubr.bf16.gmra.mrb[8].mxu0 %v4389_v7  ;;  %2261 = vmatprep.mubr.bf16.mxu1 %v4390_v24  ;;  %v1398_v7 = vld [vmem:[#allocation2 + $0x88] sm:$0xff] }
 0x24b   : > { %2454 = vmatprep.mubr.bf16.mxu0 %v4392_v9  ;;  %3874 = vmatpush1.bf16.msra.mxu1 %v5216_v21  ;;  %v4402_v21 = vld [vmem:[%s4947_s30 + $0xa4] ss:$16 sps:$4 sm:$0xff]   ;;  %v4444_v24 = vld [vmem:[%s4947_s30 + $0x108] ss:$16 sps:$4 sm:$0xff]   ;;  %v1421_v9 = vpack.c.bf16 %v1398_v7, %v1397_v5 }
 0x24c   : > { %3859 = vmatprep.subr.bf16.mxu1 %v5222_v23  ;;  %v4404_v23 = vld [vmem:[%s4947_s30 + $0xac] ss:$16 sps:$4 sm:$0xff]  }
 0x24f   : > { %3875 = vmatpush1.bf16.msra.mxu1 %v5227_v25  ;;  %v4406_v25 = vld [vmem:[%s4947_s30 + $0xa0] ss:$16 sps:$4 sm:$0xff]  }
 0x250   : > { %3860 = vmatprep.subr.bf16.mxu1 %v5232_v27  ;;  %v4407_v27 = vld [vmem:[%s4947_s30 + $0xa8] ss:$16 sps:$4 sm:$0xff]  }
 0x251   : > { %2262 = vmatmul.mubr.bf16.gmra.mrb[12].mxu1 %v4394_v11  ;;  %v4447_v11 = vld [vmem:[%s4947_s30 + $0x12c] ss:$16 sps:$4 sm:$0xff]  }
 0x252   : > { %2455 = vmatmul.mubr.bf16.gmra.mrb[12].mxu0 %v4395_v13  ;;  %2271 = vmatprep.mubr.bf16.mxu1 %v4396_v15  ;;  %v1399_v13 = vld [vmem:[#allocation2 + $0x90] sm:$0xff]  ;;  %v1400_v15 = vld [vmem:[#allocation2 + $0x98] sm:$0xff] }
 0x253   : > { %2464 = vmatprep.mubr.bf16.mxu0 %v4398_v26  ;;  %3876 = vmatpush1.bf16.msra.mxu1 %v5236_v29  ;;  %v4410_v29 = vld [vmem:[%s4947_s30 + $0xcc] ss:$16 sps:$4 sm:$0xff]   ;;  %v4449_v26 = vld [vmem:[%s4947_s30 + $0x128] ss:$16 sps:$4 sm:$0xff]  }
 0x254   : > { %3861 = vmatprep.subr.bf16.mxu1 %v5242_v31  ;;  %v4413_v31 = vld [vmem:[%s4947_s30 + $0xc8] ss:$16 sps:$4 sm:$0xff]  }
 0x257   : > { %3877 = vmatpush1.bf16.msra.mxu1 %v5247_v33  ;;  %v4416_v33 = vld [vmem:[%s4947_s30 + $0xec] ss:$16 sps:$4 sm:$0xff]  }
 0x258   : > { %3862 = vmatprep.subr.bf16.mxu1 %v5252_v35  ;;  %v4419_v35 = vld [vmem:[%s4947_s30 + $0xe8] ss:$16 sps:$4 sm:$0xff]  }
 0x259   : > { %2272 = vmatmul.mubr.bf16.gmra.mrb[16].mxu1 %v4400_v17  ;;  %v1422_v17 = vpack.c.bf16 %v1400_v15, %v1399_v13 }
 0x25a   : > { %2465 = vmatmul.mubr.bf16.gmra.mrb[16].mxu0 %v4401_v19  ;;  %2281 = vmatprep.mubr.bf16.mxu1 %v4402_v21  ;;  %v4450_v19 = vld [vmem:[%s4947_s30 + $0x14c] ss:$16 sps:$4 sm:$0xff]   ;;  %v1401_v21 = vld [vmem:[#allocation2 + $0xa0] sm:$0xff] }
 0x25b   : > { %2474 = vmatprep.mubr.bf16.mxu0 %v4404_v23  ;;  %3878 = vmatpush1.bf16.msra.mxu1 %v5256_v37  ;;  %v4682_v37 = vmov 0   ;;  %v1402_v23 = vld [vmem:[#allocation2 + $0xa8] sm:$0xff] }
 0x25c   : > { %3863 = vmatprep.subr.bf16.mxu1 %v5262_v39  ;;  %v1382_v39 = vld [vmem:[#allocation2 + $0x8] sm:$0xff] }
 0x25f   : > { %3879 = vmatpush1.bf16.msra.mxu1 %v5267_v41  ;;  %v1413_v41 = vpack.c.bf16 %v1382_v39, %v1381_v38  ;;  %v4459_v39 = vld [vmem:[%s4947_s30 + $0x1ac] ss:$16 sps:$4 sm:$0xff]  }
 0x260   : > { %3864 = vmatprep.subr.bf16.mxu1 %v5272_v43  ;;  %v1383_v43 = vld [vmem:[#allocation2 + $0x10] sm:$0xff] }
 0x261   : > { %2282 = vmatmul.mubr.bf16.gmra.mrb[20].mxu1 %v4406_v25  ;;  %v1414_v46 = vpack.c.bf16 %v1384_v44, %v1383_v43  ;;  %v4452_v25 = vld [vmem:[%s4947_s30 + $0x148] ss:$16 sps:$4 sm:$0xff]   ;;  %v4462_v44 = vld [vmem:[%s4947_s30 + $0x1cc] ss:$16 sps:$4 sm:$0xff]  }
 0x262   : > { %2475 = vmatmul.mubr.bf16.gmra.mrb[20].mxu0 %v4407_v27  ;;  %2291 = vmatprep.mubr.bf16.mxu1 %v4408_v28  ;;  %v1423_v27 = vpack.c.bf16 %v1402_v23, %v1401_v21  ;;  %v4453_v28 = vld [vmem:[%s4947_s30 + $0x16c] ss:$16 sps:$4 sm:$0xff]   ;;  %v2837_v21 = vld [vmem:[%s376_s9] sm:$0x3]  ;;  %s3629_s9 = sshll.u32 %s5766_s10, 7 }
 0x263   : > { %2484 = vmatprep.mubr.bf16.mxu0 %v4410_v29  ;;  %3880 = vmatpush1.bf16.msra.mxu1 %v5276_v45  ;;  %v4425_v45 = vld [vmem:[%s4947_s30 + $0x120] ss:$16 sps:$4 sm:$0xff]   ;;  %s3151_s7 = sadd.s32 %s3629_s9, %s4964_s17  ;;  %s3154_s17 = sshll.u32 %s4976_s20, 4  ;;  %s5644_s17 = int_to_ptr.vmem [resolvable:$true] %s3154_s17 }
 0x264   : > { %3865 = vmatprep.subr.bf16.mxu1 %v5282_v47  ;;  %v4426_v47 = vld [vmem:[%s4947_s30 + $0x144] ss:$16 sps:$4 sm:$0xff]   ;;  %s3590_s21 = sshll.u32 %s3151_s7, 6  ;;  %s4524_s24 = scalar_lea.vmem %s5644_s17, 4096 }
 0x265   : > { %v1403_v29 = vld [vmem:[#allocation2 + $0xb0] sm:$0xff]  ;;  %s5642_s8 = scalar_lea.hbm %s5767_s12, %s3590_s21  ;;  %p4525_p10 = scmp.ne.s32.totalorder %s5644_s17, %s4524_s24 }
 0x266   : > { %p4531_p3 = scmp.lt.s32.totalorder %s5644_s17, %s4529_s16  ;;  %p4532_p7 = scmp.lt.s32.totalorder %s4530_s27, %s4524_s24 }
 0x267   : > { %3881 = vmatpush1.bf16.msra.mxu1 %v5286_v49  ;;  %v1386_v49 = vld [vmem:[#allocation2 + $0x28] sm:$0xff]  ;;  %p4526_p1 = pnand %p4525_p10, %p5769_p11 }
 0x268   : > { %3866 = vmatprep.subr.bf16.mxu1 %v5292_v52  ;;  %v1415_v51 = vpack.c.bf16 %v1386_v49, %v1385_v48  ;;  %v4429_v52 = vld [vmem:[%s4947_s30 + $0x164] ss:$16 sps:$4 sm:$0xff]   ;;  %v4465_v49 = vld [vmem:[%s4947_s30 + $0x1ec] ss:$16 sps:$4 sm:$0xff]   ;;  %p4533_p8 = por %p4532_p7, %p4531_p3 }
 0x269   : > { %2292 = vmatmul.mubr.bf16.gmra.mrb[24].mxu1 %v4412_v30  ;;  %v1404_v30 = vld [vmem:[#allocation2 + $0xb8] sm:$0xff]  ;;  %p4527_p4 = pneg %p4526_p1 }
 0x26a   : > { %2485 = vmatmul.mubr.bf16.gmra.mrb[24].mxu0 %v4413_v31  ;;  %2301 = vmatprep.mubr.bf16.mxu1 %v4414_v32  ;;  %v4455_v31 = vld [vmem:[%s4947_s30 + $0x168] ss:$16 sps:$4 sm:$0xff]   ;;  %v1424_v32 = vpack.c.bf16 %v1404_v30, %v1403_v29 }
 0x26b   : > { %2494 = vmatprep.mubr.bf16.mxu0 %v4416_v33  ;;  %3882 = vmatpush1.bf16.msra.mxu1 %v5299_v55  ;;  %v4431_v55 = vld [vmem:[%s4947_s30 + $0x160] ss:$16 sps:$4 sm:$0xff]   ;;  %v4456_v33 = vld [vmem:[%s4947_s30 + $0x18c] ss:$16 sps:$4 sm:$0xff]   ;;  %p4534_p13 = pnand %p4533_p8, %p4527_p4 }
 0x26c   : > { %3867 = vmatprep.subr.bf16.mxu1 %v5304_v57  ;;  %v4432_v57 = vld [vmem:[%s4947_s30 + $0x184] ss:$16 sps:$4 sm:$0xff]  }
 0x26f   : > { %3883 = vmatpush1.bf16.msra.mxu1 %v5308_v59  ;;  %v1390_v59 = vld [vmem:[#allocation2 + $0x48] sm:$0xff] }
 0x270   : > { %3868 = vmatprep.subr.bf16.mxu1 %v5314_v61  ;;  %v1417_v61 = vpack.c.bf16 %v1390_v59, %v1389_v58 }
 0x271   : > { %2302 = vmatmul.mubr.bf16.gmra.mrb[28].mxu1 %v4418_v34  ;;  %v1405_v34 = vld [vmem:[#allocation2 + $0xc0] sm:$0xff] }
 0x272   : > { %2495 = vmatmul.mubr.bf16.gmra.mrb[28].mxu0 %v4419_v35  ;;  %2311 = vmatprep.mubr.bf16.mxu1 %v4420_v36  ;;  %v1406_v35 = vld [vmem:[#allocation2 + $0xc8] sm:$0xff] }
 0x273   : > { %2676 = vmatprep.mubr.bf16.mxu0 %v4682_v37  ;;  %3884 = vmatpush1.bf16.msra.mxu1 %v5319_v63  ;;  %v1391_v63 = vld [vmem:[#allocation2 + $0x50] sm:$0xff]  ;;  %v4458_v36 = vld [vmem:[%s4947_s30 + $0x188] ss:$16 sps:$4 sm:$0xff]   ;;  %v1425_v38 = vpack.c.bf16 %v1406_v35, %v1405_v34 }
 0x274   : > { %3869 = vmatprep.subr.bf16.mxu1 %v5324_v1  ;;  %v4437_v1 = vld [vmem:[%s4947_s30 + $0x1a0] ss:$16 sps:$4 sm:$0xff]   ;;  %v1418_v2 = vpack.c.bf16 %v1392_v0, %v1391_v63 }
 0x277   : > { %3885 = vmatpush1.bf16.msra.mxu1 %v5329_v4  ;;  %v4438_v4 = vld [vmem:[%s4947_s30 + $0x1c4] ss:$16 sps:$4 sm:$0xff]  }
 0x279   : > { %2312 = vmatmul.mubr.bf16.gmra.mrb[32].mxu1 %v4422_v40  ;;  %v1407_v40 = vld [vmem:[#allocation2 + $0xd0] sm:$0xff] }
 0x27a   : > { %3538 = vmatmul.mubr.msk.bf16.vlgmr.msra.gmra.mrb[0].mxu0 %vm2595_vm1, %v1413_v41  ;;  %2321 = vmatprep.mubr.bf16.mxu1 %v4423_v42  ;;  %v1408_v41 = vld [vmem:[#allocation2 + $0xd8] sm:$0xff] }
 0x27b   : > { %2686 = vmatprep.mubr.bf16.mxu0 %v4682_v37  ;;  %v4461_v42 = vld [vmem:[%s4947_s30 + $0x1a8] ss:$16 sps:$4 sm:$0xff]   ;;  %v1426_v43 = vpack.c.bf16 %v1408_v41, %v1407_v40 }
 0x281   : > { %2322 = vmatmul.mubr.bf16.gmra.mrb[36].mxu1 %v4425_v45  ;;  %v1409_v45 = vld [vmem:[#allocation2 + $0xe0] sm:$0xff] }
 0x282   : > { %3539 = vmatmul.mubr.msk.bf16.gmra.mrb[4].mxu0 %vm2595_vm1, %v1414_v46  ;;  %2331 = vmatprep.mubr.bf16.mxu1 %v4426_v47  ;;  %v1410_v46 = vld [vmem:[#allocation2 + $0xe8] sm:$0xff] }
 0x283   : > { %2696 = vmatprep.mubr.bf16.mxu0 %v4682_v37  ;;  %v4464_v47 = vld [vmem:[%s4947_s30 + $0x1c8] ss:$16 sps:$4 sm:$0xff]   ;;  %v1427_v48 = vpack.c.bf16 %v1410_v46, %v1409_v45 }
 0x289   : > { %2332 = vmatmul.mubr.bf16.gmra.mrb[40].mxu1 %v4428_v50  ;;  %v1411_v50 = vld [vmem:[#allocation2 + $0xf0] sm:$0xff] }
 0x28a   : > { %3540 = vmatmul.mubr.msk.bf16.gmra.mrb[8].mxu0 %vm2595_vm1, %v1415_v51  ;;  %2341 = vmatprep.mubr.bf16.mxu1 %v4429_v52  ;;  %v1412_v51 = vld [vmem:[#allocation2 + $0xf8] sm:$0xff] }
 0x28b   : > { %2706 = vmatprep.mubr.bf16.mxu0 %v4682_v37  ;;  %v4467_v52 = vld [vmem:[%s4947_s30 + $0x1e8] ss:$16 sps:$4 sm:$0xff]   ;;  %v1428_v53 = vpack.c.bf16 %v1412_v51, %v1411_v50 }
 0x291   : > { %2342 = vmatmul.mubr.bf16.gmra.mrb[44].mxu1 %v4431_v55 }
 0x292   : > { %3541 = vmatmul.mubr.msk.bf16.gmra.mrb[12].mxu0 %vm2595_vm1, %v1416_v56  ;;  %2351 = vmatprep.mubr.bf16.mxu1 %v4432_v57 }
 0x293   : > { %2716 = vmatprep.mubr.bf16.mxu0 %v4682_v37 }
 0x299   : > { %2352 = vmatmul.mubr.bf16.gmra.mrb[48].mxu1 %v4434_v60 }
 0x29a   : > { %3542 = vmatmul.mubr.msk.bf16.gmra.mrb[16].mxu0 %vm2595_vm1, %v1417_v61  ;;  %2361 = vmatprep.mubr.bf16.mxu1 %v4435_v62 }
 0x29b   : > { %2726 = vmatprep.mubr.bf16.mxu0 %v4682_v37 }
 0x2a1   : > { %2362 = vmatmul.mubr.bf16.gmra.mrb[52].mxu1 %v4437_v1 }
 0x2a2   : > { %3543 = vmatmul.mubr.msk.bf16.gmra.mrb[20].mxu0 %vm2595_vm1, %v1418_v2  ;;  %2371 = vmatprep.mubr.bf16.mxu1 %v4438_v4 }
 0x2a3   : > { %2736 = vmatprep.mubr.bf16.mxu0 %v4682_v37 }
 0x2a9   : > { %2372 = vmatmul.mubr.bf16.gmra.mrb[56].mxu1 %v4440_v10 }
 0x2aa   : > { %3544 = vmatmul.mubr.msk.bf16.gmra.mrb[24].mxu0 %vm2595_vm1, %v1419_v12  ;;  %2381 = vmatprep.mubr.bf16.mxu1 %v4441_v14 }
 0x2ab   : > { %2746 = vmatprep.mubr.bf16.mxu0 %v4682_v37 }
 0x2b1   : > { %2382 = vmatmul.mubr.bf16.gmra.mrb[60].mxu1 %v4443_v20 }
 0x2b2   : > { %3545 = vmatmul.mubr.msk.bf16.gmra.mrb[28].mxu0 %vm2595_vm1, %v1420_v3  ;;  %2504 = vmatprep.mubr.bf16.mxu1 %v4446_v22 }
 0x2b3   : > { %2756 = vmatprep.mubr.bf16.mxu0 %v4682_v37 }
 0x2b9   : > { %2505 = vmatmul.mubr.bf16.vlgmr.msra.gmra.mrb[32].mxu1 %v4444_v24 }
 0x2ba   : > { %3546 = vmatmul.mubr.msk.bf16.gmra.mrb[32].mxu0 %vm2595_vm1, %v1421_v9  ;;  %2514 = vmatprep.mubr.bf16.mxu1 %v4447_v11  ;;  %v2839_v9 = vlaneseq }
 0x2bb   : > { %2766 = vmatprep.mubr.bf16.mxu0 %v4682_v37 }
 0x2bc   : > { %v2840_v11 = vshrl.u32 %v2839_v9, 7 }
 0x2be   : > { %v2845_v23 = vsub.s32 1, %v2840_v11 }
 0x2c1   : > { %2515 = vmatmul.mubr.bf16.gmra.mrb[36].mxu1 %v4449_v26 }
 0x2c2   : > { %3547 = vmatmul.mubr.msk.bf16.gmra.mrb[36].mxu0 %vm2595_vm1, %v1422_v17  ;;  %2524 = vmatprep.mubr.bf16.mxu1 %v4450_v19  ;;  %v2841_v19 = vsub.s32 0, %v2840_v11 }
 0x2c3   : > { %2776 = vmatprep.mubr.bf16.mxu0 %v4682_v37 }
 0x2c9   : > { %2525 = vmatmul.mubr.bf16.gmra.mrb[40].mxu1 %v4452_v25  ;;  %v5514_v25 = vrot.slane %v2837_v21, %v2841_v19 }
 0x2ca   : > { %3548 = vmatmul.mubr.msk.bf16.gmra.mrb[40].mxu0 %vm2595_vm1, %v1423_v27  ;;  %2534 = vmatprep.mubr.bf16.mxu1 %v4453_v28  ;;  %v5516_v28 = vrot.slane %v2837_v21, %v2845_v23 }
 0x2cb   : > { %2786 = vmatprep.mubr.bf16.mxu0 %v4682_v37 }
 0x2d1   : > { %2535 = vmatmul.mubr.bf16.gmra.mrb[44].mxu1 %v4455_v31 }
 0x2d2   : > { %3549 = vmatmul.mubr.msk.bf16.gmra.mrb[44].mxu0 %vm2595_vm1, %v1424_v32  ;;  %2544 = vmatprep.mubr.bf16.mxu1 %v4456_v33 }
 0x2d3   : > { %2796 = vmatprep.mubr.bf16.mxu0 %v4682_v37 }
 0x2d9   : > { %2545 = vmatmul.mubr.bf16.gmra.mrb[48].mxu1 %v4458_v36 }
 0x2da   : > { %3550 = vmatmul.mubr.msk.bf16.gmra.mrb[48].mxu0 %vm2595_vm1, %v1425_v38  ;;  %2554 = vmatprep.mubr.bf16.mxu1 %v4459_v39 }
 0x2db   : > { %2806 = vmatprep.mubr.bf16.mxu0 %v4682_v37 }
 0x2e1   : > { %2555 = vmatmul.mubr.bf16.gmra.mrb[52].mxu1 %v4461_v42 }
 0x2e2   : > { %3551 = vmatmul.mubr.msk.bf16.gmra.mrb[52].mxu0 %vm2595_vm1, %v1426_v43  ;;  %2564 = vmatprep.mubr.bf16.mxu1 %v4462_v44 }
 0x2e3   : > { %2816 = vmatprep.mubr.bf16.mxu0 %v4682_v37 }
 0x2e9   : > { %2565 = vmatmul.mubr.bf16.gmra.mrb[56].mxu1 %v4464_v47 }
 0x2ea   : > { %3552 = vmatmul.mubr.msk.bf16.gmra.mrb[56].mxu0 %vm2595_vm1, %v1427_v48  ;;  %2574 = vmatprep.mubr.bf16.mxu1 %v4465_v49 }
 0x2eb   : > { %2826 = vmatprep.mubr.bf16.mxu0 %v4682_v37 }
 0x2f1   : > { %2575 = vmatmul.mubr.bf16.gmra.mrb[60].mxu1 %v4467_v52 }
 0x2f2   : > { %3553 = vmatmul.mubr.msk.bf16.gmra.mrb[60].mxu0 %vm2595_vm1, %v1428_v53 }
 0x30c   : > { %v2233_v54 = vpop.f32.mrb[0].mxu1 }
 0x30d   : > { %v2235_v55 = vpop.f32.mrb[1].mxu1 }
 0x30e   : > { %v2237_v56 = vpop.f32.mrb[2].mxu1 }
 0x30f   : > { %v2239_v57 = vpop.f32.mrb[3].mxu1 }
 0x314   : > { %v2243_v58 = vpop.f32.mrb[4].mxu1 }
 0x315   : > { %v2245_v59 = vpop.f32.mrb[5].mxu1 }
 0x316   : > { %v2247_v60 = vpop.f32.mrb[6].mxu1 }
 0x317   : > { %v2249_v61 = vpop.f32.mrb[7].mxu1 }
 0x31c   : > { %v5461_v62 = vpop.f32.mrb[8].mxu1 }
 0x31d   : > { %v5463_v63 = vpop.f32.mrb[9].mxu1 }
 0x31e   : > { %v5465_v37 = vpop.f32.mrb[10].mxu1 }
 0x31f   : > { %v5467_v0 = vpop.f32.mrb[11].mxu1 }
 0x324   : > { %v5469_v1 = vpop.f32.mrb[12].mxu1 }
 0x325   : > { %v5471_v2 = vpop.f32.mrb[13].mxu1 }
 0x326   : > { %v5473_v4 = vpop.f32.mrb[14].mxu1 }
 0x327   : > { %v5475_v6 = vpop.f32.mrb[15].mxu1 }
 0x32c   : > { %v5477_v8 = vpop.f32.mrb[16].mxu1 }
 0x32d   : > { %v5479_v10 = vpop.f32.mrb[17].mxu1 }
 0x32e   : > { %v5481_v12 = vpop.f32.mrb[18].mxu1 }
 0x32f   : > { %v5483_v14 = vpop.f32.mrb[19].mxu1 }
 0x334   : > { %v5485_v16 = vpop.f32.mrb[20].mxu1 }
 0x335   : > { %v5487_v18 = vpop.f32.mrb[21].mxu1 }
 0x336   : > { %v5489_v20 = vpop.f32.mrb[22].mxu1 }
 0x337   : > { %v5491_v3 = vpop.f32.mrb[23].mxu1 }
 0x33c   : > { %v5493_v22 = vpop.f32.mrb[24].mxu1 }
 0x33d   : > { %v5495_v5 = vpop.f32.mrb[25].mxu1 }
 0x33e   : > { %v5497_v7 = vpop.f32.mrb[26].mxu1 }
 0x33f   : > { %v5499_v24 = vpop.f32.mrb[27].mxu1 }
 0x344   : > { %v5501_v13 = vpop.f32.mrb[28].mxu1 }
 0x345   : > { %v5503_v15 = vpop.f32.mrb[29].mxu1 }
 0x346   : > { %v5505_v26 = vpop.f32.mrb[30].mxu1 }
 0x347   : > { %v5507_v17 = vpop.f32.mrb[31].mxu1 }
 0x34d   : > { %v2678_v27 = vpop.f32.mrb[0].mxu0 }
 0x34e   : > { %v3886_v29 = vadd.f32 %v2678_v27, %v2233_v54  ;;  %v2680_v30 = vpop.f32.mrb[1].mxu0 }
 0x34f   : > { %v3887_v31 = vadd.f32 %v2680_v30, %v2235_v55  ;;  %v2682_v32 = vpop.f32.mrb[2].mxu0 }
 0x350   : > { %v2849_v33 = vadd.f32 %v3886_v29, %v5514_v25  ;;  %v3888_v34 = vadd.f32 %v2682_v32, %v2237_v56  ;;  %v2684_v35 = vpop.f32.mrb[3].mxu0 }
 0x351   : > { %v2850_v36 = vadd.f32 %v3887_v31, %v5516_v28  ;;  %v3889_v38 = vadd.f32 %v2684_v35, %v2239_v57 }
 0x352   : > { %v2851_v39 = vadd.f32 %v3888_v34, %v5514_v25 }
 0x353   : > { %v3597_v40 = vpack.c.bf16 %v2850_v36, %v2849_v33  ;;  %v2852_v41 = vadd.f32 %v3889_v38, %v5516_v28 }
 0x355   : > { %3105 = vst [vmem:[%s4976_s20] sm:$0xff] %v3597_v40  ;;  %v3598_v42 = vpack.c.bf16 %v2852_v41, %v2851_v39  ;;  %v2688_v43 = vpop.f32.mrb[4].mxu0 }
 0x356   : > { %v3890_v44 = vadd.f32 %v2688_v43, %v2243_v58  ;;  %v2690_v45 = vpop.f32.mrb[5].mxu0 }
 0x357   : > { %3106 = vst [vmem:[%s4976_s20 + $0x8] sm:$0xff] %v3598_v42  ;;  %v3891_v46 = vadd.f32 %v2690_v45, %v2245_v59  ;;  %v2692_v47 = vpop.f32.mrb[6].mxu0 }
 0x358   : > { %v2853_v48 = vadd.f32 %v3890_v44, %v5514_v25  ;;  %v3892_v49 = vadd.f32 %v2692_v47, %v2247_v60  ;;  %v2694_v50 = vpop.f32.mrb[7].mxu0 }
 0x359   : > { %v2854_v51 = vadd.f32 %v3891_v46, %v5516_v28  ;;  %v3893_v52 = vadd.f32 %v2694_v50, %v2249_v61 }
 0x35a   : > { %v2855_v53 = vadd.f32 %v3892_v49, %v5514_v25 }
 0x35b   : > { %v3599_v54 = vpack.c.bf16 %v2854_v51, %v2853_v48  ;;  %v2856_v55 = vadd.f32 %v3893_v52, %v5516_v28 }
 0x35d   : > { %3107 = vst [vmem:[%s4976_s20 + $0x10] sm:$0xff] %v3599_v54  ;;  %v3600_v56 = vpack.c.bf16 %v2856_v55, %v2855_v53  ;;  %v2698_v57 = vpop.f32.mrb[8].mxu0 }
 0x35e   : > { %v3894_v58 = vadd.f32 %v2698_v57, %v5461_v62  ;;  %v2700_v59 = vpop.f32.mrb[9].mxu0 }
 0x35f   : > { %3108 = vst [vmem:[%s4976_s20 + $0x18] sm:$0xff] %v3600_v56  ;;  %v3895_v60 = vadd.f32 %v2700_v59, %v5463_v63  ;;  %v2702_v9 = vpop.f32.mrb[10].mxu0 }
 0x360   : > { %v2857_v11 = vadd.f32 %v3894_v58, %v5514_v25  ;;  %v3896_v61 = vadd.f32 %v2702_v9, %v5465_v37  ;;  %v2704_v19 = vpop.f32.mrb[11].mxu0 }
 0x361   : > { %v2858_v21 = vadd.f32 %v3895_v60, %v5516_v28  ;;  %v3897_v23 = vadd.f32 %v2704_v19, %v5467_v0 }
 0x362   : > { %v2859_v27 = vadd.f32 %v3896_v61, %v5514_v25 }
 0x363   : > { %v3601_v29 = vpack.c.bf16 %v2858_v21, %v2857_v11  ;;  %v2860_v62 = vadd.f32 %v3897_v23, %v5516_v28 }
 0x365   : > { %3109 = vst [vmem:[%s4976_s20 + $0x20] sm:$0xff] %v3601_v29  ;;  %v3602_v30 = vpack.c.bf16 %v2860_v62, %v2859_v27  ;;  %v2708_v31 = vpop.f32.mrb[12].mxu0 }
 0x366   : > { %v3898_v63 = vadd.f32 %v2708_v31, %v5469_v1  ;;  %v2710_v32 = vpop.f32.mrb[13].mxu0 }
 0x367   : > { %3110 = vst [vmem:[%s4976_s20 + $0x28] sm:$0xff] %v3602_v30  ;;  %v3899_v37 = vadd.f32 %v2710_v32, %v5471_v2  ;;  %v2712_v33 = vpop.f32.mrb[14].mxu0 }
 0x368   : > { %v2861_v34 = vadd.f32 %v3898_v63, %v5514_v25  ;;  %v3900_v0 = vadd.f32 %v2712_v33, %v5473_v4  ;;  %v2714_v35 = vpop.f32.mrb[15].mxu0 }
 0x369   : > { %v2862_v36 = vadd.f32 %v3899_v37, %v5516_v28  ;;  %v3901_v38 = vadd.f32 %v2714_v35, %v5475_v6 }
 0x36a   : > { %v2863_v39 = vadd.f32 %v3900_v0, %v5514_v25 }
 0x36b   : > { %v3603_v40 = vpack.c.bf16 %v2862_v36, %v2861_v34  ;;  %v2864_v1 = vadd.f32 %v3901_v38, %v5516_v28 }
 0x36d   : > { %3111 = vst [vmem:[%s4976_s20 + $0x30] sm:$0xff] %v3603_v40  ;;  %v3604_v41 = vpack.c.bf16 %v2864_v1, %v2863_v39  ;;  %v2718_v42 = vpop.f32.mrb[16].mxu0 }
 0x36e   : > { %v3902_v2 = vadd.f32 %v2718_v42, %v5477_v8  ;;  %v2720_v43 = vpop.f32.mrb[17].mxu0 }
 0x36f   : > { %3112 = vst [vmem:[%s4976_s20 + $0x38] sm:$0xff] %v3604_v41  ;;  %v3903_v4 = vadd.f32 %v2720_v43, %v5479_v10  ;;  %v2722_v44 = vpop.f32.mrb[18].mxu0 }
 0x370   : > { %v2865_v45 = vadd.f32 %v3902_v2, %v5514_v25  ;;  %v3904_v6 = vadd.f32 %v2722_v44, %v5481_v12  ;;  %v2724_v46 = vpop.f32.mrb[19].mxu0 }
 0x371   : > { %v2866_v47 = vadd.f32 %v3903_v4, %v5516_v28  ;;  %v3905_v48 = vadd.f32 %v2724_v46, %v5483_v14 }
 0x372   : > { %v2867_v49 = vadd.f32 %v3904_v6, %v5514_v25 }
 0x373   : > { %v3605_v50 = vpack.c.bf16 %v2866_v47, %v2865_v45  ;;  %v2868_v8 = vadd.f32 %v3905_v48, %v5516_v28 }
 0x375   : > { %3113 = vst [vmem:[%s4976_s20 + $0x40] sm:$0xff] %v3605_v50  ;;  %v3606_v51 = vpack.c.bf16 %v2868_v8, %v2867_v49  ;;  %v2728_v52 = vpop.f32.mrb[20].mxu0 }
 0x376   : > { %v3906_v10 = vadd.f32 %v2728_v52, %v5485_v16  ;;  %v2730_v53 = vpop.f32.mrb[21].mxu0 }
 0x377   : > { %3114 = vst [vmem:[%s4976_s20 + $0x48] sm:$0xff] %v3606_v51  ;;  %v3907_v12 = vadd.f32 %v2730_v53, %v5487_v18  ;;  %v2732_v54 = vpop.f32.mrb[22].mxu0 }
 0x378   : > { %v2869_v55 = vadd.f32 %v3906_v10, %v5514_v25  ;;  %v3908_v14 = vadd.f32 %v2732_v54, %v5489_v20  ;;  %v2734_v56 = vpop.f32.mrb[23].mxu0 }
 0x379   : > { %v2870_v57 = vadd.f32 %v3907_v12, %v5516_v28  ;;  %v3909_v58 = vadd.f32 %v2734_v56, %v5491_v3 }
 0x37a   : > { %v2871_v59 = vadd.f32 %v3908_v14, %v5514_v25 }
 0x37b   : > { %v3607_v60 = vpack.c.bf16 %v2870_v57, %v2869_v55  ;;  %v2872_v16 = vadd.f32 %v3909_v58, %v5516_v28 }
 0x37d   : > { %3115 = vst [vmem:[%s4976_s20 + $0x50] sm:$0xff] %v3607_v60  ;;  %v3608_v9 = vpack.c.bf16 %v2872_v16, %v2871_v59  ;;  %v2738_v11 = vpop.f32.mrb[24].mxu0 }
 0x37e   : > { %v3910_v18 = vadd.f32 %v2738_v11, %v5493_v22  ;;  %v2740_v61 = vpop.f32.mrb[25].mxu0 }
 0x37f   : > { %3116 = vst [vmem:[%s4976_s20 + $0x58] sm:$0xff] %v3608_v9  ;;  %v3911_v20 = vadd.f32 %v2740_v61, %v5495_v5  ;;  %v2742_v19 = vpop.f32.mrb[26].mxu0 }
 0x380   : > { %v2873_v21 = vadd.f32 %v3910_v18, %v5514_v25  ;;  %v3912_v3 = vadd.f32 %v2742_v19, %v5497_v7  ;;  %v2744_v23 = vpop.f32.mrb[27].mxu0 }
 0x381   : > { %v2874_v27 = vadd.f32 %v3911_v20, %v5516_v28  ;;  %v3913_v29 = vadd.f32 %v2744_v23, %v5499_v24 }
 0x382   : > { %v2875_v62 = vadd.f32 %v3912_v3, %v5514_v25 }
 0x383   : > { %v3609_v30 = vpack.c.bf16 %v2874_v27, %v2873_v21  ;;  %v2876_v22 = vadd.f32 %v3913_v29, %v5516_v28 }
 0x385   : > { %3117 = vst [vmem:[%s4976_s20 + $0x60] sm:$0xff] %v3609_v30  ;;  %v3610_v31 = vpack.c.bf16 %v2876_v22, %v2875_v62  ;;  %v2748_v63 = vpop.f32.mrb[28].mxu0 }
 0x386   : > { %v3914_v5 = vadd.f32 %v2748_v63, %v5501_v13  ;;  %v2750_v32 = vpop.f32.mrb[29].mxu0 }
 0x387   : > { %3118 = vst [vmem:[%s4976_s20 + $0x68] sm:$0xff] %v3610_v31  ;;  %v3915_v7 = vadd.f32 %v2750_v32, %v5503_v15  ;;  %v2752_v37 = vpop.f32.mrb[30].mxu0 }
 0x388   : > { %v2877_v33 = vadd.f32 %v3914_v5, %v5514_v25  ;;  %v3916_v24 = vadd.f32 %v2752_v37, %v5505_v26  ;;  %v2754_v34 = vpop.f32.mrb[31].mxu0 }
 0x389   : > { %v2878_v0 = vadd.f32 %v3915_v7, %v5516_v28  ;;  %v3917_v35 = vadd.f32 %v2754_v34, %v5507_v17 }
 0x38a   : > { %v2879_v36 = vadd.f32 %v3916_v24, %v5514_v25 }
 0x38b   : > { %v3611_v38 = vpack.c.bf16 %v2878_v0, %v2877_v33  ;;  %v2880_v13 = vadd.f32 %v3917_v35, %v5516_v28 }
 0x38c   : > { %v2506_v40 = vpop.f32.mrb[32].mxu1 }
 0x38d   : > { %3119 = vst [vmem:[%s4976_s20 + $0x70] sm:$0xff] %v3611_v38  ;;  %v3612_v39 = vpack.c.bf16 %v2880_v13, %v2879_v36  ;;  %v2758_v15 = vpop.f32.mrb[32].mxu0  ;;  %v2508_v41 = vpop.f32.mrb[33].mxu1 }
 0x38e   : > { %v3918_v1 = vadd.f32 %v2758_v15, %v2506_v40  ;;  %v2760_v42 = vpop.f32.mrb[33].mxu0  ;;  %v2510_v2 = vpop.f32.mrb[34].mxu1 }
 0x38f   : > { %3120 = vst [vmem:[%s4976_s20 + $0x78] sm:$0xff] %v3612_v39  ;;  %v3919_v26 = vadd.f32 %v2760_v42, %v2508_v41  ;;  %v2762_v43 = vpop.f32.mrb[34].mxu0  ;;  %v2512_v44 = vpop.f32.mrb[35].mxu1 }
 0x390   : > { %v2881_v4 = vadd.f32 %v3918_v1, %v5514_v25  ;;  %v3920_v17 = vadd.f32 %v2762_v43, %v2510_v2  ;;  %v2764_v45 = vpop.f32.mrb[35].mxu0 }
 0x391   : > { %v2882_v6 = vadd.f32 %v3919_v26, %v5516_v28  ;;  %v3921_v46 = vadd.f32 %v2764_v45, %v2512_v44 }
 0x392   : > { %v2883_v47 = vadd.f32 %v3920_v17, %v5514_v25 }
 0x393   : > { %v3613_v48 = vpack.c.bf16 %v2882_v6, %v2881_v4  ;;  %v2884_v49 = vadd.f32 %v3921_v46, %v5516_v28 }
 0x394   : > { %v2516_v8 = vpop.f32.mrb[36].mxu1 }
 0x395   : > { %3121 = vst [vmem:[%s4976_s20 + $0x80] sm:$0xff] %v3613_v48  ;;  %v3614_v50 = vpack.c.bf16 %v2884_v49, %v2883_v47  ;;  %v2768_v51 = vpop.f32.mrb[36].mxu0  ;;  %v2518_v10 = vpop.f32.mrb[37].mxu1 }
 0x396   : > { %v3922_v52 = vadd.f32 %v2768_v51, %v2516_v8  ;;  %v2770_v53 = vpop.f32.mrb[37].mxu0  ;;  %v2520_v54 = vpop.f32.mrb[38].mxu1 }
 0x397   : > { %3122 = vst [vmem:[%s4976_s20 + $0x88] sm:$0xff] %v3614_v50  ;;  %v3923_v12 = vadd.f32 %v2770_v53, %v2518_v10  ;;  %v2772_v55 = vpop.f32.mrb[38].mxu0  ;;  %v2522_v57 = vpop.f32.mrb[39].mxu1 }
 0x398   : > { %v2885_v14 = vadd.f32 %v3922_v52, %v5514_v25  ;;  %v3924_v56 = vadd.f32 %v2772_v55, %v2520_v54  ;;  %v2774_v58 = vpop.f32.mrb[39].mxu0 }
 0x399   : > { %v2886_v59 = vadd.f32 %v3923_v12, %v5516_v28  ;;  %v3925_v60 = vadd.f32 %v2774_v58, %v2522_v57 }
 0x39a   : > { %v2887_v16 = vadd.f32 %v3924_v56, %v5514_v25 }
 0x39b   : > { %v3615_v9 = vpack.c.bf16 %v2886_v59, %v2885_v14  ;;  %v2888_v11 = vadd.f32 %v3925_v60, %v5516_v28 }
 0x39c   : > { %v2526_v61 = vpop.f32.mrb[40].mxu1 }
 0x39d   : > { %3123 = vst [vmem:[%s4976_s20 + $0x90] sm:$0xff] %v3615_v9  ;;  %v3616_v18 = vpack.c.bf16 %v2888_v11, %v2887_v16  ;;  %v2778_v20 = vpop.f32.mrb[40].mxu0  ;;  %v2528_v21 = vpop.f32.mrb[41].mxu1 }
 0x39e   : > { %v3926_v19 = vadd.f32 %v2778_v20, %v2526_v61  ;;  %v2780_v3 = vpop.f32.mrb[41].mxu0  ;;  %v2530_v27 = vpop.f32.mrb[42].mxu1 }
 0x39f   : > { %3124 = vst [vmem:[%s4976_s20 + $0x98] sm:$0xff] %v3616_v18  ;;  %v3927_v23 = vadd.f32 %v2780_v3, %v2528_v21  ;;  %v2782_v29 = vpop.f32.mrb[42].mxu0  ;;  %v2532_v22 = vpop.f32.mrb[43].mxu1 }
 0x3a0   : > { %v2889_v62 = vadd.f32 %v3926_v19, %v5514_v25  ;;  %v3928_v30 = vadd.f32 %v2782_v29, %v2530_v27  ;;  %v2784_v31 = vpop.f32.mrb[43].mxu0 }
 0x3a1   : > { %v2890_v63 = vadd.f32 %v3927_v23, %v5516_v28  ;;  %v3929_v5 = vadd.f32 %v2784_v31, %v2532_v22 }
 0x3a2   : > { %v2891_v32 = vadd.f32 %v3928_v30, %v5514_v25 }
 0x3a3   : > { %v3617_v7 = vpack.c.bf16 %v2890_v63, %v2889_v62  ;;  %v2892_v37 = vadd.f32 %v3929_v5, %v5516_v28 }
 0x3a4   : > { %v2536_v24 = vpop.f32.mrb[44].mxu1 }
 0x3a5   : > { %3125 = vst [vmem:[%s4976_s20 + $0xa0] sm:$0xff] %v3617_v7  ;;  %v3618_v33 = vpack.c.bf16 %v2892_v37, %v2891_v32  ;;  %v2788_v34 = vpop.f32.mrb[44].mxu0  ;;  %v2538_v35 = vpop.f32.mrb[45].mxu1 }
 0x3a6   : > { %v3930_v0 = vadd.f32 %v2788_v34, %v2536_v24  ;;  %v2790_v36 = vpop.f32.mrb[45].mxu0  ;;  %v2540_v13 = vpop.f32.mrb[46].mxu1 }
 0x3a7   : > { %3126 = vst [vmem:[%s4976_s20 + $0xa8] sm:$0xff] %v3618_v33  ;;  %v3931_v38 = vadd.f32 %v2790_v36, %v2538_v35  ;;  %v2792_v39 = vpop.f32.mrb[46].mxu0  ;;  %v2542_v1 = vpop.f32.mrb[47].mxu1 }
 0x3a8   : > { %v2893_v40 = vadd.f32 %v3930_v0, %v5514_v25  ;;  %v3932_v15 = vadd.f32 %v2792_v39, %v2540_v13  ;;  %v2794_v41 = vpop.f32.mrb[47].mxu0 }
 0x3a9   : > { %v2894_v42 = vadd.f32 %v3931_v38, %v5516_v28  ;;  %v3933_v26 = vadd.f32 %v2794_v41, %v2542_v1 }
 0x3aa   : > { %v2895_v2 = vadd.f32 %v3932_v15, %v5514_v25 }
 0x3ab   : > { %v3619_v43 = vpack.c.bf16 %v2894_v42, %v2893_v40  ;;  %v2896_v4 = vadd.f32 %v3933_v26, %v5516_v28 }
 0x3ac   : > { %v2546_v44 = vpop.f32.mrb[48].mxu1 }
 0x3ad   : > { %3127 = vst [vmem:[%s4976_s20 + $0xb0] sm:$0xff] %v3619_v43  ;;  %v3620_v17 = vpack.c.bf16 %v2896_v4, %v2895_v2  ;;  %v2798_v45 = vpop.f32.mrb[48].mxu0  ;;  %v2548_v46 = vpop.f32.mrb[49].mxu1 }
 0x3ae   : > { %v3934_v6 = vadd.f32 %v2798_v45, %v2546_v44  ;;  %v2800_v47 = vpop.f32.mrb[49].mxu0  ;;  %v2550_v49 = vpop.f32.mrb[50].mxu1 }
 0x3af   : > { %3128 = vst [vmem:[%s4976_s20 + $0xb8] sm:$0xff] %v3620_v17  ;;  %v3935_v48 = vadd.f32 %v2800_v47, %v2548_v46  ;;  %v2802_v50 = vpop.f32.mrb[50].mxu0  ;;  %v2552_v52 = vpop.f32.mrb[51].mxu1 }
 0x3b0   : > { %v2897_v8 = vadd.f32 %v3934_v6, %v5514_v25  ;;  %v3936_v51 = vadd.f32 %v2802_v50, %v2550_v49  ;;  %v2804_v10 = vpop.f32.mrb[51].mxu0 }
 0x3b1   : > { %v2898_v53 = vadd.f32 %v3935_v48, %v5516_v28  ;;  %v3937_v12 = vadd.f32 %v2804_v10, %v2552_v52 }
 0x3b2   : > { %v2899_v54 = vadd.f32 %v3936_v51, %v5514_v25 }
 0x3b3   : > { %v3621_v55 = vpack.c.bf16 %v2898_v53, %v2897_v8  ;;  %v2900_v14 = vadd.f32 %v3937_v12, %v5516_v28 }
 0x3b4   : > { %v2556_v57 = vpop.f32.mrb[52].mxu1 }
 0x3b5   : > { %3129 = vst [vmem:[%s4976_s20 + $0xc0] sm:$0xff] %v3621_v55  ;;  %v3622_v56 = vpack.c.bf16 %v2900_v14, %v2899_v54  ;;  %v2808_v58 = vpop.f32.mrb[52].mxu0  ;;  %v2558_v60 = vpop.f32.mrb[53].mxu1 }
 0x3b6   : > { %v3938_v59 = vadd.f32 %v2808_v58, %v2556_v57  ;;  %v2810_v16 = vpop.f32.mrb[53].mxu0  ;;  %v2560_v11 = vpop.f32.mrb[54].mxu1 }
 0x3b7   : > { %3130 = vst [vmem:[%s4976_s20 + $0xc8] sm:$0xff] %v3622_v56  ;;  %v3939_v9 = vadd.f32 %v2810_v16, %v2558_v60  ;;  %v2812_v18 = vpop.f32.mrb[54].mxu0  ;;  %v2562_v19 = vpop.f32.mrb[55].mxu1 }
 0x3b8   : > { %v2901_v61 = vadd.f32 %v3938_v59, %v5514_v25  ;;  %v3940_v20 = vadd.f32 %v2812_v18, %v2560_v11  ;;  %v2814_v21 = vpop.f32.mrb[55].mxu0 }
 0x3b9   : > { %v2902_v3 = vadd.f32 %v3939_v9, %v5516_v28  ;;  %v3941_v23 = vadd.f32 %v2814_v21, %v2562_v19 }
 0x3ba   : > { %v2903_v27 = vadd.f32 %v3940_v20, %v5514_v25 }
 0x3bb   : > { %v3623_v29 = vpack.c.bf16 %v2902_v3, %v2901_v61  ;;  %v2904_v62 = vadd.f32 %v3941_v23, %v5516_v28 }
 0x3bc   : > { %v2566_v22 = vpop.f32.mrb[56].mxu1 }
 0x3bd   : > { %3131 = vst [vmem:[%s4976_s20 + $0xd0] sm:$0xff] %v3623_v29  ;;  %v3624_v30 = vpack.c.bf16 %v2904_v62, %v2903_v27  ;;  %v2818_v31 = vpop.f32.mrb[56].mxu0  ;;  %v2568_v5 = vpop.f32.mrb[57].mxu1 }
 0x3be   : > { %v3942_v63 = vadd.f32 %v2818_v31, %v2566_v22  ;;  %v2820_v32 = vpop.f32.mrb[57].mxu0  ;;  %v2570_v37 = vpop.f32.mrb[58].mxu1 }
 0x3bf   : > { %3132 = vst [vmem:[%s4976_s20 + $0xd8] sm:$0xff] %v3624_v30  ;;  %v3943_v7 = vadd.f32 %v2820_v32, %v2568_v5  ;;  %v2822_v33 = vpop.f32.mrb[58].mxu0  ;;  %v2572_v0 = vpop.f32.mrb[59].mxu1 }
 0x3c0   : > { %v2905_v24 = vadd.f32 %v3942_v63, %v5514_v25  ;;  %v3944_v34 = vadd.f32 %v2822_v33, %v2570_v37  ;;  %v2824_v35 = vpop.f32.mrb[59].mxu0 }
 0x3c1   : > { %v2906_v36 = vadd.f32 %v3943_v7, %v5516_v28  ;;  %v3945_v38 = vadd.f32 %v2824_v35, %v2572_v0 }
 0x3c2   : > { %v2907_v13 = vadd.f32 %v3944_v34, %v5514_v25 }
 0x3c3   : > { %v3625_v39 = vpack.c.bf16 %v2906_v36, %v2905_v24  ;;  %v2908_v40 = vadd.f32 %v3945_v38, %v5516_v28 }
 0x3c4   : > { %v2576_v1 = vpop.f32.mrb[60].mxu1 }
 0x3c5   : > { %3133 = vst [vmem:[%s4976_s20 + $0xe0] sm:$0xff] %v3625_v39  ;;  %v3626_v15 = vpack.c.bf16 %v2908_v40, %v2907_v13  ;;  %v2828_v41 = vpop.f32.mrb[60].mxu0  ;;  %v2578_v26 = vpop.f32.mrb[61].mxu1 }
 0x3c6   : > { %v3946_v42 = vadd.f32 %v2828_v41, %v2576_v1  ;;  %v2830_v2 = vpop.f32.mrb[61].mxu0  ;;  %v2580_v4 = vpop.f32.mrb[62].mxu1 }
 0x3c7   : > { %3134 = vst [vmem:[%s4976_s20 + $0xe8] sm:$0xff] %v3626_v15  ;;  %v3947_v43 = vadd.f32 %v2830_v2, %v2578_v26  ;;  %v2832_v17 = vpop.f32.mrb[62].mxu0  ;;  %v2582_v6 = vpop.f32.mrb[63].mxu1 }
 0x3c8   : > { %v2909_v44 = vadd.f32 %v3946_v42, %v5514_v25  ;;  %v3948_v45 = vadd.f32 %v2832_v17, %v2580_v4  ;;  %v2834_v46 = vpop.f32.mrb[63].mxu0 }
 0x3c9   : > { %v2910_v47 = vadd.f32 %v3947_v43, %v5516_v28  ;;  %v3949_v48 = vadd.f32 %v2834_v46, %v2582_v6 }
 0x3ca   : > { %v2911_v49 = vadd.f32 %v3948_v45, %v5514_v25 }
 0x3cb   : > { %v3627_v50 = vpack.c.bf16 %v2910_v47, %v2909_v44  ;;  %v2912_v8 = vadd.f32 %v3949_v48, %v5516_v28 }
 0x3cd   : > { %3135 = vst [vmem:[%s4976_s20 + $0xf0] sm:$0xff] %v3627_v50  ;;  %v3628_v51 = vpack.c.bf16 %v2912_v8, %v2911_v49 }
 0x3cf   : > { %3136 = vst [vmem:[%s4976_s20 + $0xf8] sm:$0xff] %v3628_v51 }
 0x3d0   : > { %4537 = shalt.err (!%p4534_p13)
}
 0x3d1   : > { %s4538_s20 = scalar_lea.hbm %s5642_s8, 4096  ;;  %s4542_s10 = scalar_lea.hbm %s5767_s12, 24576 }
 0x3d2   : > { %p4539_p9 = scmp.ne.s32.totalorder %s5642_s8, %s4538_s20  ;;  %p4543_p5 = scmp.lt.u32.totalorder %s5642_s8, %s5767_s12 }
 0x3d3   : > { %p4544_p2 = scmp.lt.u32.totalorder %s4542_s10, %s4538_s20  ;;  %p4546_p10 = scmp.lt.u32.totalorder %s4538_s20, %s5642_s8 }
 0x3d4   : > { %p4540_p12 = pnand %p4539_p9, %p5769_p11 }
 0x3d5   : > { %p4545_p6 = por %p4544_p2, %p4543_p5 }
 0x3d6   : > { %p4541_p0 = pneg %p4540_p12 }
 0x3d7   : > { %p4547_p1 = por %p4546_p10, %p4545_p6 }
 0x3d9   : > { %p4548_p4 = pnand %p4547_p1, %p4541_p0 }
 0x3db   : > { %4551 = shalt.err (!%p4548_p4)
}
 0x3dc   : > { %s4684_s21 = smov 128   ;;  %s4685_s15 = smov 256  }
 0x3dd   : > { %s4686_s28 = smov 8  }
 0x3de   : > { %4018 = dma.vmem_to_hbm [thread:$0]  (%p5769_p11), %s5644_s17, 4096, %s5642_s8, %s5650_s26, %s4684_s21, %s4685_s15, %s4686_s28  }
 0x3df PF: > { %p4024_p3 = scmp.ge.s32.totalorder %s4674_s6, 2  ;;  %s3169_s0 = sand.u32 1, %s4622_s18  }
 0x3e0   : > { %p5770_p7 = scmp.ne.s32.totalorder %s5762_s13, 0  ;;  %s3170_s24 = scalar_lea.sflag [#allocation5], %s3169_s0 }
 0x3e2   : > { %p4021_p8 = pnand %p4024_p3, %p5770_p7 }
 0x3e4   : > { %4617 = dma.done.wait (!%p4021_p8), %s3170_s24, 4096  }
 0x3e5   : > { %4619 = vsyncadd (!%p4021_p8), %s3170_s24, 4294963200  ;;  %s24_s6 = sadd.s32 1, %s4674_s6   ;;  %s5772_s11 = sld [smem:[#allocation13_spill]] }
 0x3e6   : > { %p5679_p13 = scmp.ge.s32.totalorder %s24_s6, 8   ;;  %s5773_s20 = sld [smem:[#allocation21_spill]] }
 0x3e7   : > { %s5774_s17 = sld [smem:[#allocation19_spill]]  ;;  %s5775_s8 = sld [smem:[#allocation14_spill]] }
 0x3e8   : > { %s5776_s26 = sld [smem:[#allocation20_spill]]  ;;  %s5777_s28 = sld [smem:[#allocation16_spill]] }
 0x3e9   : > { %s5778_s13 = sld [smem:[#allocation17_spill]]  ;;  %s5779_s30 = sld [smem:[#allocation18_spill]] }
 0x3ea   : > { %s5780_s18 = smov %s4626_s19  ;;  %s5782_s21 = smov %s4638_s22 }
 0x3eb   : > { %s5781_s19 = smov %s5772_s11  ;;  %s5783_s22 = smov %s4642_s23 }
 0x3ec   : > { %s5785_s24 = smov %s4650_s25  ;;  %s5787_s27 = smov %s4666_s29 }
 0x3ed   : > { %s5784_s23 = smov %s5774_s17  ;;  %s5786_s25 = smov %s5775_s8 }
 0x3ee   :  { %23 = sbr.rel (!%p5679_p13) target bundleno = 15 (0xf), region = 151 }
 0x3ef   : > { %s5788_s29 = smov %s5778_s13 }
 0x3f5   :  { %3175 = vsyncpa [#allocation4], 1 }
 0x3f6   :  { %3177 = vsyncpa [#allocation4 + $0x1], 1 }
 0x3f7   :  { %3178 = vsyncpa [#allocation7], 1 }
 0x3f8   :  { %3180 = vsyncpa [#allocation7 + $0x1], 1 }
 0x3f9   :  { %3181 = vsyncpa [#allocation5], 1 }
 0x3fa   :  { %3183 = vsyncpa [#allocation5 + $0x1], 1 }

</bundles_post_ra>
